<compile_context>
chip_gen: v7x
topology: tpu7x:2x2x1
jax: 0.10.0
libtpu: 0.0.40
codegen_flags: <defaults>
</compile_context>

<pallas_src>
import functools
import math

import jax
import jax.numpy as jnp
from jax.experimental import pallas as pl
from jax.experimental.pallas import tpu as pltpu


def _bilstm_dir_kernel(x_ref, wih_ref, whh_ref, b_ref, o_ref, gx_ref, h_ref, c_ref):
    """One direction (selected by grid axis 0) of a bidirectional LSTM layer.

    x_ref  : (T*B, D)   time-major flattened inputs (shared by both directions)
    wih_ref: (D, 4H)    this direction's input->gates weight (pre-transposed)
    whh_ref: (H, 4H)    this direction's hidden->gates weight (pre-transposed)
    b_ref  : (1, 4H)    combined bias (b_ih + b_hh)
    o_ref  : (T*B, H)   this direction's hidden states for every timestep
    gx_ref : (T*B, 4H)  VMEM scratch: precomputed x@W_ih + b for all timesteps
    h_ref  : (B, H)     VMEM carry (hidden)
    c_ref  : (B, H)     VMEM carry (cell)
    Gate order (PyTorch): i, f, g, o.
    """
    d = pl.program_id(0)                 # 0 = forward, 1 = backward
    B, H = h_ref.shape
    TB = x_ref.shape[0]
    T = TB // B

    # Hoisted input projection: one MXU push for all T timesteps (off the serial path).
    gx_ref[...] = (
        jnp.dot(x_ref[...], wih_ref[...], preferred_element_type=jnp.float32)
        + b_ref[...]
    )

    # Fresh carries for this direction (single grid step per direction).
    h_ref[...] = jnp.zeros_like(h_ref)
    c_ref[...] = jnp.zeros_like(c_ref)

    whh = whh_ref[...]                   # (H, 4H), resident across the time loop

    def step(s, carry):
        # Forward walks t = 0..T-1, backward walks t = T-1..0; it both reads the
        # precomputed gates and writes its output at row block t*B.
        tt = s + d * (T - 1 - 2 * s)
        row = pl.multiple_of(tt * B, B)

        g = gx_ref[pl.ds(row, B), :] + jnp.dot(
            h_ref[...], whh, preferred_element_type=jnp.float32
        )                                # (B, 4H)

        i_g = jax.nn.sigmoid(g[:, 0 * H:1 * H])
        f_g = jax.nn.sigmoid(g[:, 1 * H:2 * H])
        g_g = jnp.tanh(g[:, 2 * H:3 * H])
        o_g = jax.nn.sigmoid(g[:, 3 * H:4 * H])

        c_new = f_g * c_ref[...] + i_g * g_g
        h_new = o_g * jnp.tanh(c_new)

        c_ref[...] = c_new
        h_ref[...] = h_new
        o_ref[pl.ds(row, B), :] = h_new.astype(o_ref.dtype)
        return carry

    jax.lax.fori_loop(0, T, step, 0, unroll=True)


def bilstm_layer(x_flat, batch, w_ih, w_hh, bias):
    """One bidirectional layer.

    x_flat: (T*B, D) time-major flattened input.
    w_ih  : (2, D, 4H), w_hh: (2, H, 4H), bias: (2, 1, 4H)  (dim 0 = fwd/bwd)
    Returns (T*B, 2H) with [forward, backward] concatenated on the feature axis,
    matching torch's bidirectional output layout.
    """
    TB, D = x_flat.shape
    H4 = w_ih.shape[-1]
    H = H4 // 4

    out = pl.pallas_call(
        _bilstm_dir_kernel,
        out_shape=jax.ShapeDtypeStruct((2, TB, H), jnp.float32),
        grid_spec=pltpu.PrefetchScalarGridSpec(
            num_scalar_prefetch=0,
            grid=(2,),                                        # direction axis
            in_specs=[
                pl.BlockSpec((TB, D), lambda d: (0, 0)),      # x (shared)
                pl.BlockSpec((None, D, H4), lambda d: (d, 0, 0)),
                pl.BlockSpec((None, H, H4), lambda d: (d, 0, 0)),
                pl.BlockSpec((None, 1, H4), lambda d: (d, 0, 0)),
            ],
            out_specs=pl.BlockSpec((None, TB, H), lambda d: (d, 0, 0)),
            scratch_shapes=[
                pltpu.VMEM((TB, H4), jnp.float32),            # gx slab
                pltpu.VMEM((batch, H), jnp.float32),          # h carry
                pltpu.VMEM((batch, H), jnp.float32),          # c carry
            ],
        ),
        compiler_params=pltpu.CompilerParams(
            # Directions are independent recurrences: lets v7x run them on its
            # two TensorCores; degenerates to a 2-iteration loop elsewhere.
            dimension_semantics=("parallel",),
        ),
    )(x_flat, w_ih, w_hh, bias)

    # (2, T*B, H) -> (T*B, 2H) with fwd features first, then bwd (torch layout).
    return jnp.moveaxis(out, 0, 1).reshape(TB, 2 * H)


def lstm_forward(x, params):
    """Bidirectional multi-layer LSTM forward (== milc.LSTM.forward).

    x: (B, T, F) batch-first. Returns (B, T, hidden_size).
    """
    B, T, _ = x.shape
    # Single layout change to time-major flattened; stays flat between layers.
    h = jnp.transpose(x, (1, 0, 2)).reshape(T * B, -1)
    # TODO(synk): all layers/directions could be fused into ONE pallas_call with an
    # in-kernel layer loop (weights total ~40 KiB); kept per-layer launches for clarity.
    for lp in params:
        h = bilstm_layer(h, B, lp["w_ih"], lp["w_hh"], lp["bias"])
    H2 = h.shape[-1]
    return jnp.transpose(h.reshape(T, B, H2), (1, 0, 2))


def init_lstm_params(key, input_size, hidden_size, n_layers, gain=0.65):
    """Synthetic init mirroring the module: weights ~ xavier_normal(gain=0.65),
    biases left at nn.LSTM default U(-1/sqrt(H), 1/sqrt(H)); b_ih and b_hh are drawn
    separately and pre-summed. Weights stored pre-transposed as (D_in, 4H)/(H, 4H)
    and stacked over direction (dim 0: fwd, bwd)."""
    H = hidden_size // 2
    H4 = 4 * H
    params = []
    for layer in range(n_layers):
        d_in = input_size if layer == 0 else hidden_size
        w_ih_l, w_hh_l, b_l = [], [], []
        for _ in range(2):  # fwd, bwd
            key, k1, k2, k3, k4 = jax.random.split(key, 5)
            std_ih = gain * math.sqrt(2.0 / (d_in + H4))
            std_hh = gain * math.sqrt(2.0 / (H + H4))
            w_ih_l.append(std_ih * jax.random.normal(k1, (d_in, H4), jnp.float32))
            w_hh_l.append(std_hh * jax.random.normal(k2, (H, H4), jnp.float32))
            bound = 1.0 / math.sqrt(H)
            b_ih = jax.random.uniform(k3, (H4,), jnp.float32, -bound, bound)
            b_hh = jax.random.uniform(k4, (H4,), jnp.float32, -bound, bound)
            b_l.append((b_ih + b_hh).reshape(1, H4))
        params.append({
            "w_ih": jnp.stack(w_ih_l),   # (2, d_in, 4H)
            "w_hh": jnp.stack(w_hh_l),   # (2, H, 4H)
            "bias": jnp.stack(b_l),      # (2, 1, 4H)
        })
    return params


if __name__ == "__main__":
    # model_cfg.lstm: input_feature_size=16, hidden_size=32, n_layers=2
    B, T, INPUT_SIZE, HIDDEN_SIZE, N_LAYERS = 2, 8, 16, 32, 2

    key = jax.random.PRNGKey(0)
    k_x, k_p = jax.random.split(key)
    x = jax.random.normal(k_x, (B, T, INPUT_SIZE), jnp.float32)
    params = init_lstm_params(k_p, INPUT_SIZE, HIDDEN_SIZE, N_LAYERS)

    out = jax.jit(functools.partial(lstm_forward, params=params))(x)
    out = jax.block_until_ready(out)

    assert out.shape == (B, T, HIDDEN_SIZE), out.shape
    assert out.dtype == jnp.float32
    assert bool(jnp.all(jnp.isfinite(out)))
    print("KERNEL_OK")
</pallas_src>

<mosaic_0001>
module attributes {stable_mosaic.version = 11 : i64} {
  func.func @_bilstm_dir_kernel(%arg0: i32, %arg1: memref<16x16xf32, #tpu.memory_space<vmem>>, %arg2: memref<1x16x64xf32, #tpu.memory_space<vmem>>, %arg3: memref<1x16x64xf32, #tpu.memory_space<vmem>>, %arg4: memref<1x1x64xf32, #tpu.memory_space<vmem>>, %arg5: memref<1x16x16xf32, #tpu.memory_space<vmem>>, %arg6: memref<16x64xf32, #tpu.memory_space<vmem>>, %arg7: memref<2x16xf32, #tpu.memory_space<vmem>>, %arg8: memref<2x16xf32, #tpu.memory_space<vmem>>) attributes {dimension_semantics = [#tpu.dimension_semantics<parallel>], iteration_bounds = array<i64: 2>, scalar_prefetch = 0 : i64, scratch_operands = 3 : i64, tpu.core_type = #tpu.core_type<tc>, window_params = [{pipeline_mode = #tpu.pipeline_mode<synchronous>, transform_indices = @transform_0, window_bounds = array<i64: 16, 16>}, {transform_indices = @transform_1, window_bounds = array<i64: 1, 16, 64>}, {transform_indices = @transform_2, window_bounds = array<i64: 1, 16, 64>}, {transform_indices = @transform_3, window_bounds = array<i64: 1, 1, 64>}, {transform_indices = @transform_4, window_bounds = array<i64: 1, 16, 16>}]} {
    %c0 = arith.constant 0 : index
    %c0_0 = arith.constant 0 : index
    %0 = vector.load %arg1[%c0, %c0_0] : memref<16x16xf32, #tpu.memory_space<vmem>>, vector<16x16xf32>
    %c0_1 = arith.constant 0 : index
    %c0_2 = arith.constant 0 : index
    %c0_3 = arith.constant 0 : index
    %1 = vector.load %arg2[%c0_1, %c0_2, %c0_3] : memref<1x16x64xf32, #tpu.memory_space<vmem>>, vector<1x16x64xf32>
    %2 = vector.shape_cast %1 : vector<1x16x64xf32> to vector<16x64xf32>
    %cst = arith.constant dense<0.000000e+00> : vector<16x64xf32>
    %3 = tpu.matmul %0, %2, %cst {dimension_numbers = #tpu.dot_dimension_numbers<[1], [0], [0], [1], [0, 0, 1, 1], [], []>} : vector<16x16xf32>, vector<16x64xf32>, vector<16x64xf32> -> vector<16x64xf32>
    %c0_4 = arith.constant 0 : index
    %c0_5 = arith.constant 0 : index
    %c0_6 = arith.constant 0 : index
    %4 = vector.load %arg4[%c0_4, %c0_5, %c0_6] : memref<1x1x64xf32, #tpu.memory_space<vmem>>, vector<1x1x64xf32>
    %5 = vector.shape_cast %4 : vector<1x1x64xf32> to vector<1x64xf32>
    %6 = vector.broadcast %5 : vector<1x64xf32> to vector<16x64xf32>
    %7 = arith.addf %3, %6 : vector<16x64xf32>
    %c0_7 = arith.constant 0 : index
    %c0_8 = arith.constant 0 : index
    %8 = vector.load %arg6[%c0_7, %c0_8] : memref<16x64xf32, #tpu.memory_space<vmem>>, vector<16x64xf32>
    tpu.vector_store %arg6[%c0_7, %c0_8], %7 {strides = array<i32>} : memref<16x64xf32, #tpu.memory_space<vmem>>, vector<16x64xf32>,
    %cst_9 = arith.constant 0.000000e+00 : f32
    %9 = vector.broadcast %cst_9 : f32 to vector<2x16xf32>
    %c0_10 = arith.constant 0 : index
    %c0_11 = arith.constant 0 : index
    %10 = vector.load %arg7[%c0_10, %c0_11] : memref<2x16xf32, #tpu.memory_space<vmem>>, vector<2x16xf32>
    tpu.vector_store %arg7[%c0_10, %c0_11], %9 {strides = array<i32>} : memref<2x16xf32, #tpu.memory_space<vmem>>, vector<2x16xf32>,
    %cst_12 = arith.constant 0.000000e+00 : f32
    %11 = vector.broadcast %cst_12 : f32 to vector<2x16xf32>
    %c0_13 = arith.constant 0 : index
    %c0_14 = arith.constant 0 : index
    %12 = vector.load %arg8[%c0_13, %c0_14] : memref<2x16xf32, #tpu.memory_space<vmem>>, vector<2x16xf32>
    tpu.vector_store %arg8[%c0_13, %c0_14], %11 {strides = array<i32>} : memref<2x16xf32, #tpu.memory_space<vmem>>, vector<2x16xf32>,
    %c0_15 = arith.constant 0 : index
    %c0_16 = arith.constant 0 : index
    %c0_17 = arith.constant 0 : index
    %13 = vector.load %arg3[%c0_15, %c0_16, %c0_17] : memref<1x16x64xf32, #tpu.memory_space<vmem>>, vector<1x16x64xf32>
    %14 = vector.shape_cast %13 : vector<1x16x64xf32> to vector<16x64xf32>
    %c0_i32 = arith.constant 0 : i32
    %c2_i32 = arith.constant 2 : i32
    %15 = arith.muli %c2_i32, %c0_i32 : i32
    %c7_i32 = arith.constant 7 : i32
    %16 = arith.subi %c7_i32, %15 : i32
    %17 = arith.muli %arg0, %16 : i32
    %18 = arith.addi %c0_i32, %17 : i32
    %c2_i32_18 = arith.constant 2 : i32
    %19 = arith.muli %18, %c2_i32_18 : i32
    %20 = tpu.assume_multiple %19, 2 : i32
    %21 = arith.index_cast %20 : i32 to index
    %c0_19 = arith.constant 0 : index
    %22 = vector.load %arg6[%21, %c0_19] : memref<16x64xf32, #tpu.memory_space<vmem>>, vector<2x64xf32>
    %c0_20 = arith.constant 0 : index
    %c0_21 = arith.constant 0 : index
    %23 = vector.load %arg7[%c0_20, %c0_21] : memref<2x16xf32, #tpu.memory_space<vmem>>, vector<2x16xf32>
    %cst_22 = arith.constant dense<0.000000e+00> : vector<2x64xf32>
    %24 = tpu.matmul %23, %14, %cst_22 {dimension_numbers = #tpu.dot_dimension_numbers<[1], [0], [0], [1], [0, 0, 1, 1], [], []>} : vector<2x16xf32>, vector<16x64xf32>, vector<2x64xf32> -> vector<2x64xf32>
    %25 = arith.addf %22, %24 : vector<2x64xf32>
    %26 = vector.extract_strided_slice %25 {offsets = [0, 0], sizes = [2, 16], strides = [1, 1]} : vector<2x64xf32> to vector<2x16xf32>
    %27 = arith.negf %26 : vector<2x16xf32>
    %28 = math.exp %27 : vector<2x16xf32>
    %cst_23 = arith.constant 1.000000e+00 : f32
    %29 = vector.broadcast %cst_23 : f32 to vector<2x16xf32>
    %30 = arith.addf %29, %28 : vector<2x16xf32>
    %31 = arith.divf %29, %30 : vector<2x16xf32>
    %32 = vector.extract_strided_slice %25 {offsets = [0, 16], sizes = [2, 16], strides = [1, 1]} : vector<2x64xf32> to vector<2x16xf32>
    %33 = arith.negf %32 : vector<2x16xf32>
    %34 = math.exp %33 : vector<2x16xf32>
    %cst_24 = arith.constant 1.000000e+00 : f32
    %35 = vector.broadcast %cst_24 : f32 to vector<2x16xf32>
    %36 = arith.addf %35, %34 : vector<2x16xf32>
    %37 = arith.divf %35, %36 : vector<2x16xf32>
    %38 = vector.extract_strided_slice %25 {offsets = [0, 32], sizes = [2, 16], strides = [1, 1]} : vector<2x64xf32> to vector<2x16xf32>
    %39 = math.tanh %38 : vector<2x16xf32>
    %40 = vector.extract_strided_slice %25 {offsets = [0, 48], sizes = [2, 16], strides = [1, 1]} : vector<2x64xf32> to vector<2x16xf32>
    %41 = arith.negf %40 : vector<2x16xf32>
    %42 = math.exp %41 : vector<2x16xf32>
    %cst_25 = arith.constant 1.000000e+00 : f32
    %43 = vector.broadcast %cst_25 : f32 to vector<2x16xf32>
    %44 = arith.addf %43, %42 : vector<2x16xf32>
    %45 = arith.divf %43, %44 : vector<2x16xf32>
    %c0_26 = arith.constant 0 : index
    %c0_27 = arith.constant 0 : index
    %46 = vector.load %arg8[%c0_26, %c0_27] : memref<2x16xf32, #tpu.memory_space<vmem>>, vector<2x16xf32>
    %47 = arith.mulf %37, %46 : vector<2x16xf32>
    %48 = arith.mulf %31, %39 : vector<2x16xf32>
    %49 = arith.addf %47, %48 : vector<2x16xf32>
    %50 = math.tanh %49 : vector<2x16xf32>
    %51 = arith.mulf %45, %50 : vector<2x16xf32>
    %c0_28 = arith.constant 0 : index
    %c0_29 = arith.constant 0 : index
    %52 = vector.load %arg8[%c0_28, %c0_29] : memref<2x16xf32, #tpu.memory_space<vmem>>, vector<2x16xf32>
    tpu.vector_store %arg8[%c0_28, %c0_29], %49 {strides = array<i32>} : memref<2x16xf32, #tpu.memory_space<vmem>>, vector<2x16xf32>,
    %c0_30 = arith.constant 0 : index
    %c0_31 = arith.constant 0 : index
    %53 = vector.load %arg7[%c0_30, %c0_31] : memref<2x16xf32, #tpu.memory_space<vmem>>, vector<2x16xf32>
    tpu.vector_store %arg7[%c0_30, %c0_31], %51 {strides = array<i32>} : memref<2x16xf32, #tpu.memory_space<vmem>>, vector<2x16xf32>,
    %c0_32 = arith.constant 0 : index
    %54 = arith.index_cast %20 : i32 to index
    %c0_33 = arith.constant 0 : index
    %55 = vector.load %arg5[%c0_32, %54, %c0_33] : memref<1x16x16xf32, #tpu.memory_space<vmem>>, vector<1x2x16xf32>
    %56 = vector.shape_cast %55 : vector<1x2x16xf32> to vector<2x16xf32>
    %57 = vector.shape_cast %51 : vector<2x16xf32> to vector<1x2x16xf32>
    tpu.vector_store %arg5[%c0_32, %54, %c0_33], %57 {strides = array<i32>} : memref<1x16x16xf32, #tpu.memory_space<vmem>>, vector<1x2x16xf32>,
    %c1_i32 = arith.constant 1 : i32
    %c2_i32_34 = arith.constant 2 : i32
    %58 = arith.muli %c2_i32_34, %c1_i32 : i32
    %c7_i32_35 = arith.constant 7 : i32
    %59 = arith.subi %c7_i32_35, %58 : i32
    %60 = arith.muli %arg0, %59 : i32
    %61 = arith.addi %c1_i32, %60 : i32
    %c2_i32_36 = arith.constant 2 : i32
    %62 = arith.muli %61, %c2_i32_36 : i32
    %63 = tpu.assume_multiple %62, 2 : i32
    %64 = arith.index_cast %63 : i32 to index
    %c0_37 = arith.constant 0 : index
    %65 = vector.load %arg6[%64, %c0_37] : memref<16x64xf32, #tpu.memory_space<vmem>>, vector<2x64xf32>
    %c0_38 = arith.constant 0 : index
    %c0_39 = arith.constant 0 : index
    %66 = vector.load %arg7[%c0_38, %c0_39] : memref<2x16xf32, #tpu.memory_space<vmem>>, vector<2x16xf32>
    %cst_40 = arith.constant dense<0.000000e+00> : vector<2x64xf32>
    %67 = tpu.matmul %66, %14, %cst_40 {dimension_numbers = #tpu.dot_dimension_numbers<[1], [0], [0], [1], [0, 0, 1, 1], [], []>} : vector<2x16xf32>, vector<16x64xf32>, vector<2x64xf32> -> vector<2x64xf32>
    %68 = arith.addf %65, %67 : vector<2x64xf32>
    %69 = vector.extract_strided_slice %68 {offsets = [0, 0], sizes = [2, 16], strides = [1, 1]} : vector<2x64xf32> to vector<2x16xf32>
    %70 = arith.negf %69 : vector<2x16xf32>
    %71 = math.exp %70 : vector<2x16xf32>
    %cst_41 = arith.constant 1.000000e+00 : f32
    %72 = vector.broadcast %cst_41 : f32 to vector<2x16xf32>
    %73 = arith.addf %72, %71 : vector<2x16xf32>
    %74 = arith.divf %72, %73 : vector<2x16xf32>
    %75 = vector.extract_strided_slice %68 {offsets = [0, 16], sizes = [2, 16], strides = [1, 1]} : vector<2x64xf32> to vector<2x16xf32>
    %76 = arith.negf %75 : vector<2x16xf32>
    %77 = math.exp %76 : vector<2x16xf32>
    %cst_42 = arith.constant 1.000000e+00 : f32
    %78 = vector.broadcast %cst_42 : f32 to vector<2x16xf32>
    %79 = arith.addf %78, %77 : vector<2x16xf32>
    %80 = arith.divf %78, %79 : vector<2x16xf32>
    %81 = vector.extract_strided_slice %68 {offsets = [0, 32], sizes = [2, 16], strides = [1, 1]} : vector<2x64xf32> to vector<2x16xf32>
    %82 = math.tanh %81 : vector<2x16xf32>
    %83 = vector.extract_strided_slice %68 {offsets = [0, 48], sizes = [2, 16], strides = [1, 1]} : vector<2x64xf32> to vector<2x16xf32>
    %84 = arith.negf %83 : vector<2x16xf32>
    %85 = math.exp %84 : vector<2x16xf32>
    %cst_43 = arith.constant 1.000000e+00 : f32
    %86 = vector.broadcast %cst_43 : f32 to vector<2x16xf32>
    %87 = arith.addf %86, %85 : vector<2x16xf32>
    %88 = arith.divf %86, %87 : vector<2x16xf32>
    %c0_44 = arith.constant 0 : index
    %c0_45 = arith.constant 0 : index
    %89 = vector.load %arg8[%c0_44, %c0_45] : memref<2x16xf32, #tpu.memory_space<vmem>>, vector<2x16xf32>
    %90 = arith.mulf %80, %89 : vector<2x16xf32>
    %91 = arith.mulf %74, %82 : vector<2x16xf32>
    %92 = arith.addf %90, %91 : vector<2x16xf32>
    %93 = math.tanh %92 : vector<2x16xf32>
    %94 = arith.mulf %88, %93 : vector<2x16xf32>
    %c0_46 = arith.constant 0 : index
    %c0_47 = arith.constant 0 : index
    %95 = vector.load %arg8[%c0_46, %c0_47] : memref<2x16xf32, #tpu.memory_space<vmem>>, vector<2x16xf32>
    tpu.vector_store %arg8[%c0_46, %c0_47], %92 {strides = array<i32>} : memref<2x16xf32, #tpu.memory_space<vmem>>, vector<2x16xf32>,
    %c0_48 = arith.constant 0 : index
    %c0_49 = arith.constant 0 : index
    %96 = vector.load %arg7[%c0_48, %c0_49] : memref<2x16xf32, #tpu.memory_space<vmem>>, vector<2x16xf32>
    tpu.vector_store %arg7[%c0_48, %c0_49], %94 {strides = array<i32>} : memref<2x16xf32, #tpu.memory_space<vmem>>, vector<2x16xf32>,
    %c0_50 = arith.constant 0 : index
    %97 = arith.index_cast %63 : i32 to index
    %c0_51 = arith.constant 0 : index
    %98 = vector.load %arg5[%c0_50, %97, %c0_51] : memref<1x16x16xf32, #tpu.memory_space<vmem>>, vector<1x2x16xf32>
    %99 = vector.shape_cast %98 : vector<1x2x16xf32> to vector<2x16xf32>
    %100 = vector.shape_cast %94 : vector<2x16xf32> to vector<1x2x16xf32>
    tpu.vector_store %arg5[%c0_50, %97, %c0_51], %100 {strides = array<i32>} : memref<1x16x16xf32, #tpu.memory_space<vmem>>, vector<1x2x16xf32>,
    %c2_i32_52 = arith.constant 2 : i32
    %c2_i32_53 = arith.constant 2 : i32
    %101 = arith.muli %c2_i32_53, %c2_i32_52 : i32
    %c7_i32_54 = arith.constant 7 : i32
    %102 = arith.subi %c7_i32_54, %101 : i32
    %103 = arith.muli %arg0, %102 : i32
    %104 = arith.addi %c2_i32_52, %103 : i32
    %c2_i32_55 = arith.constant 2 : i32
    %105 = arith.muli %104, %c2_i32_55 : i32
    %106 = tpu.assume_multiple %105, 2 : i32
    %107 = arith.index_cast %106 : i32 to index
    %c0_56 = arith.constant 0 : index
    %108 = vector.load %arg6[%107, %c0_56] : memref<16x64xf32, #tpu.memory_space<vmem>>, vector<2x64xf32>
    %c0_57 = arith.constant 0 : index
    %c0_58 = arith.constant 0 : index
    %109 = vector.load %arg7[%c0_57, %c0_58] : memref<2x16xf32, #tpu.memory_space<vmem>>, vector<2x16xf32>
    %cst_59 = arith.constant dense<0.000000e+00> : vector<2x64xf32>
    %110 = tpu.matmul %109, %14, %cst_59 {dimension_numbers = #tpu.dot_dimension_numbers<[1], [0], [0], [1], [0, 0, 1, 1], [], []>} : vector<2x16xf32>, vector<16x64xf32>, vector<2x64xf32> -> vector<2x64xf32>
    %111 = arith.addf %108, %110 : vector<2x64xf32>
    %112 = vector.extract_strided_slice %111 {offsets = [0, 0], sizes = [2, 16], strides = [1, 1]} : vector<2x64xf32> to vector<2x16xf32>
    %113 = arith.negf %112 : vector<2x16xf32>
    %114 = math.exp %113 : vector<2x16xf32>
    %cst_60 = arith.constant 1.000000e+00 : f32
    %115 = vector.broadcast %cst_60 : f32 to vector<2x16xf32>
    %116 = arith.addf %115, %114 : vector<2x16xf32>
    %117 = arith.divf %115, %116 : vector<2x16xf32>
    %118 = vector.extract_strided_slice %111 {offsets = [0, 16], sizes = [2, 16], strides = [1, 1]} : vector<2x64xf32> to vector<2x16xf32>
    %119 = arith.negf %118 : vector<2x16xf32>
    %120 = math.exp %119 : vector<2x16xf32>
    %cst_61 = arith.constant 1.000000e+00 : f32
    %121 = vector.broadcast %cst_61 : f32 to vector<2x16xf32>
    %122 = arith.addf %121, %120 : vector<2x16xf32>
    %123 = arith.divf %121, %122 : vector<2x16xf32>
    %124 = vector.extract_strided_slice %111 {offsets = [0, 32], sizes = [2, 16], strides = [1, 1]} : vector<2x64xf32> to vector<2x16xf32>
    %125 = math.tanh %124 : vector<2x16xf32>
    %126 = vector.extract_strided_slice %111 {offsets = [0, 48], sizes = [2, 16], strides = [1, 1]} : vector<2x64xf32> to vector<2x16xf32>
    %127 = arith.negf %126 : vector<2x16xf32>
    %128 = math.exp %127 : vector<2x16xf32>
    %cst_62 = arith.constant 1.000000e+00 : f32
    %129 = vector.broadcast %cst_62 : f32 to vector<2x16xf32>
    %130 = arith.addf %129, %128 : vector<2x16xf32>
    %131 = arith.divf %129, %130 : vector<2x16xf32>
    %c0_63 = arith.constant 0 : index
    %c0_64 = arith.constant 0 : index
    %132 = vector.load %arg8[%c0_63, %c0_64] : memref<2x16xf32, #tpu.memory_space<vmem>>, vector<2x16xf32>
    %133 = arith.mulf %123, %132 : vector<2x16xf32>
    %134 = arith.mulf %117, %125 : vector<2x16xf32>
    %135 = arith.addf %133, %134 : vector<2x16xf32>
    %136 = math.tanh %135 : vector<2x16xf32>
    %137 = arith.mulf %131, %136 : vector<2x16xf32>
    %c0_65 = arith.constant 0 : index
    %c0_66 = arith.constant 0 : index
    %138 = vector.load %arg8[%c0_65, %c0_66] : memref<2x16xf32, #tpu.memory_space<vmem>>, vector<2x16xf32>
    tpu.vector_store %arg8[%c0_65, %c0_66], %135 {strides = array<i32>} : memref<2x16xf32, #tpu.memory_space<vmem>>, vector<2x16xf32>,
    %c0_67 = arith.constant 0 : index
    %c0_68 = arith.constant 0 : index
    %139 = vector.load %arg7[%c0_67, %c0_68] : memref<2x16xf32, #tpu.memory_space<vmem>>, vector<2x16xf32>
    tpu.vector_store %arg7[%c0_67, %c0_68], %137 {strides = array<i32>} : memref<2x16xf32, #tpu.memory_space<vmem>>, vector<2x16xf32>,
    %c0_69 = arith.constant 0 : index
    %140 = arith.index_cast %106 : i32 to index
    %c0_70 = arith.constant 0 : index
    %141 = vector.load %arg5[%c0_69, %140, %c0_70] : memref<1x16x16xf32, #tpu.memory_space<vmem>>, vector<1x2x16xf32>
    %142 = vector.shape_cast %141 : vector<1x2x16xf32> to vector<2x16xf32>
    %143 = vector.shape_cast %137 : vector<2x16xf32> to vector<1x2x16xf32>
    tpu.vector_store %arg5[%c0_69, %140, %c0_70], %143 {strides = array<i32>} : memref<1x16x16xf32, #tpu.memory_space<vmem>>, vector<1x2x16xf32>,
    %c3_i32 = arith.constant 3 : i32
    %c2_i32_71 = arith.constant 2 : i32
    %144 = arith.muli %c2_i32_71, %c3_i32 : i32
    %c7_i32_72 = arith.constant 7 : i32
    %145 = arith.subi %c7_i32_72, %144 : i32
    %146 = arith.muli %arg0, %145 : i32
    %147 = arith.addi %c3_i32, %146 : i32
    %c2_i32_73 = arith.constant 2 : i32
    %148 = arith.muli %147, %c2_i32_73 : i32
    %149 = tpu.assume_multiple %148, 2 : i32
    %150 = arith.index_cast %149 : i32 to index
    %c0_74 = arith.constant 0 : index
    %151 = vector.load %arg6[%150, %c0_74] : memref<16x64xf32, #tpu.memory_space<vmem>>, vector<2x64xf32>
    %c0_75 = arith.constant 0 : index
    %c0_76 = arith.constant 0 : index
    %152 = vector.load %arg7[%c0_75, %c0_76] : memref<2x16xf32, #tpu.memory_space<vmem>>, vector<2x16xf32>
    %cst_77 = arith.constant dense<0.000000e+00> : vector<2x64xf32>
    %153 = tpu.matmul %152, %14, %cst_77 {dimension_numbers = #tpu.dot_dimension_numbers<[1], [0], [0], [1], [0, 0, 1, 1], [], []>} : vector<2x16xf32>, vector<16x64xf32>, vector<2x64xf32> -> vector<2x64xf32>
    %154 = arith.addf %151, %153 : vector<2x64xf32>
    %155 = vector.extract_strided_slice %154 {offsets = [0, 0], sizes = [2, 16], strides = [1, 1]} : vector<2x64xf32> to vector<2x16xf32>
    %156 = arith.negf %155 : vector<2x16xf32>
    %157 = math.exp %156 : vector<2x16xf32>
    %cst_78 = arith.constant 1.000000e+00 : f32
    %158 = vector.broadcast %cst_78 : f32 to vector<2x16xf32>
    %159 = arith.addf %158, %157 : vector<2x16xf32>
    %160 = arith.divf %158, %159 : vector<2x16xf32>
    %161 = vector.extract_strided_slice %154 {offsets = [0, 16], sizes = [2, 16], strides = [1, 1]} : vector<2x64xf32> to vector<2x16xf32>
    %162 = arith.negf %161 : vector<2x16xf32>
    %163 = math.exp %162 : vector<2x16xf32>
    %cst_79 = arith.constant 1.000000e+00 : f32
    %164 = vector.broadcast %cst_79 : f32 to vector<2x16xf32>
    %165 = arith.addf %164, %163 : vector<2x16xf32>
    %166 = arith.divf %164, %165 : vector<2x16xf32>
    %167 = vector.extract_strided_slice %154 {offsets = [0, 32], sizes = [2, 16], strides = [1, 1]} : vector<2x64xf32> to vector<2x16xf32>
    %168 = math.tanh %167 : vector<2x16xf32>
    %169 = vector.extract_strided_slice %154 {offsets = [0, 48], sizes = [2, 16], strides = [1, 1]} : vector<2x64xf32> to vector<2x16xf32>
    %170 = arith.negf %169 : vector<2x16xf32>
    %171 = math.exp %170 : vector<2x16xf32>
    %cst_80 = arith.constant 1.000000e+00 : f32
    %172 = vector.broadcast %cst_80 : f32 to vector<2x16xf32>
    %173 = arith.addf %172, %171 : vector<2x16xf32>
    %174 = arith.divf %172, %173 : vector<2x16xf32>
    %c0_81 = arith.constant 0 : index
    %c0_82 = arith.constant 0 : index
    %175 = vector.load %arg8[%c0_81, %c0_82] : memref<2x16xf32, #tpu.memory_space<vmem>>, vector<2x16xf32>
    %176 = arith.mulf %166, %175 : vector<2x16xf32>
    %177 = arith.mulf %160, %168 : vector<2x16xf32>
    %178 = arith.addf %176, %177 : vector<2x16xf32>
    %179 = math.tanh %178 : vector<2x16xf32>
    %180 = arith.mulf %174, %179 : vector<2x16xf32>
    %c0_83 = arith.constant 0 : index
    %c0_84 = arith.constant 0 : index
    %181 = vector.load %arg8[%c0_83, %c0_84] : memref<2x16xf32, #tpu.memory_space<vmem>>, vector<2x16xf32>
    tpu.vector_store %arg8[%c0_83, %c0_84], %178 {strides = array<i32>} : memref<2x16xf32, #tpu.memory_space<vmem>>, vector<2x16xf32>,
    %c0_85 = arith.constant 0 : index
    %c0_86 = arith.constant 0 : index
    %182 = vector.load %arg7[%c0_85, %c0_86] : memref<2x16xf32, #tpu.memory_space<vmem>>, vector<2x16xf32>
    tpu.vector_store %arg7[%c0_85, %c0_86], %180 {strides = array<i32>} : memref<2x16xf32, #tpu.memory_space<vmem>>, vector<2x16xf32>,
    %c0_87 = arith.constant 0 : index
    %183 = arith.index_cast %149 : i32 to index
    %c0_88 = arith.constant 0 : index
    %184 = vector.load %arg5[%c0_87, %183, %c0_88] : memref<1x16x16xf32, #tpu.memory_space<vmem>>, vector<1x2x16xf32>
    %185 = vector.shape_cast %184 : vector<1x2x16xf32> to vector<2x16xf32>
    %186 = vector.shape_cast %180 : vector<2x16xf32> to vector<1x2x16xf32>
    tpu.vector_store %arg5[%c0_87, %183, %c0_88], %186 {strides = array<i32>} : memref<1x16x16xf32, #tpu.memory_space<vmem>>, vector<1x2x16xf32>,
    %c4_i32 = arith.constant 4 : i32
    %c2_i32_89 = arith.constant 2 : i32
    %187 = arith.muli %c2_i32_89, %c4_i32 : i32
    %c7_i32_90 = arith.constant 7 : i32
    %188 = arith.subi %c7_i32_90, %187 : i32
    %189 = arith.muli %arg0, %188 : i32
    %190 = arith.addi %c4_i32, %189 : i32
    %c2_i32_91 = arith.constant 2 : i32
    %191 = arith.muli %190, %c2_i32_91 : i32
    %192 = tpu.assume_multiple %191, 2 : i32
    %193 = arith.index_cast %192 : i32 to index
    %c0_92 = arith.constant 0 : index
    %194 = vector.load %arg6[%193, %c0_92] : memref<16x64xf32, #tpu.memory_space<vmem>>, vector<2x64xf32>
    %c0_93 = arith.constant 0 : index
    %c0_94 = arith.constant 0 : index
    %195 = vector.load %arg7[%c0_93, %c0_94] : memref<2x16xf32, #tpu.memory_space<vmem>>, vector<2x16xf32>
    %cst_95 = arith.constant dense<0.000000e+00> : vector<2x64xf32>
    %196 = tpu.matmul %195, %14, %cst_95 {dimension_numbers = #tpu.dot_dimension_numbers<[1], [0], [0], [1], [0, 0, 1, 1], [], []>} : vector<2x16xf32>, vector<16x64xf32>, vector<2x64xf32> -> vector<2x64xf32>
    %197 = arith.addf %194, %196 : vector<2x64xf32>
    %198 = vector.extract_strided_slice %197 {offsets = [0, 0], sizes = [2, 16], strides = [1, 1]} : vector<2x64xf32> to vector<2x16xf32>
    %199 = arith.negf %198 : vector<2x16xf32>
    %200 = math.exp %199 : vector<2x16xf32>
    %cst_96 = arith.constant 1.000000e+00 : f32
    %201 = vector.broadcast %cst_96 : f32 to vector<2x16xf32>
    %202 = arith.addf %201, %200 : vector<2x16xf32>
    %203 = arith.divf %201, %202 : vector<2x16xf32>
    %204 = vector.extract_strided_slice %197 {offsets = [0, 16], sizes = [2, 16], strides = [1, 1]} : vector<2x64xf32> to vector<2x16xf32>
    %205 = arith.negf %204 : vector<2x16xf32>
    %206 = math.exp %205 : vector<2x16xf32>
    %cst_97 = arith.constant 1.000000e+00 : f32
    %207 = vector.broadcast %cst_97 : f32 to vector<2x16xf32>
    %208 = arith.addf %207, %206 : vector<2x16xf32>
    %209 = arith.divf %207, %208 : vector<2x16xf32>
    %210 = vector.extract_strided_slice %197 {offsets = [0, 32], sizes = [2, 16], strides = [1, 1]} : vector<2x64xf32> to vector<2x16xf32>
    %211 = math.tanh %210 : vector<2x16xf32>
    %212 = vector.extract_strided_slice %197 {offsets = [0, 48], sizes = [2, 16], strides = [1, 1]} : vector<2x64xf32> to vector<2x16xf32>
    %213 = arith.negf %212 : vector<2x16xf32>
    %214 = math.exp %213 : vector<2x16xf32>
    %cst_98 = arith.constant 1.000000e+00 : f32
    %215 = vector.broadcast %cst_98 : f32 to vector<2x16xf32>
    %216 = arith.addf %215, %214 : vector<2x16xf32>
    %217 = arith.divf %215, %216 : vector<2x16xf32>
    %c0_99 = arith.constant 0 : index
    %c0_100 = arith.constant 0 : index
    %218 = vector.load %arg8[%c0_99, %c0_100] : memref<2x16xf32, #tpu.memory_space<vmem>>, vector<2x16xf32>
    %219 = arith.mulf %209, %218 : vector<2x16xf32>
    %220 = arith.mulf %203, %211 : vector<2x16xf32>
    %221 = arith.addf %219, %220 : vector<2x16xf32>
    %222 = math.tanh %221 : vector<2x16xf32>
    %223 = arith.mulf %217, %222 : vector<2x16xf32>
    %c0_101 = arith.constant 0 : index
    %c0_102 = arith.constant 0 : index
    %224 = vector.load %arg8[%c0_101, %c0_102] : memref<2x16xf32, #tpu.memory_space<vmem>>, vector<2x16xf32>
    tpu.vector_store %arg8[%c0_101, %c0_102], %221 {strides = array<i32>} : memref<2x16xf32, #tpu.memory_space<vmem>>, vector<2x16xf32>,
    %c0_103 = arith.constant 0 : index
    %c0_104 = arith.constant 0 : index
    %225 = vector.load %arg7[%c0_103, %c0_104] : memref<2x16xf32, #tpu.memory_space<vmem>>, vector<2x16xf32>
    tpu.vector_store %arg7[%c0_103, %c0_104], %223 {strides = array<i32>} : memref<2x16xf32, #tpu.memory_space<vmem>>, vector<2x16xf32>,
    %c0_105 = arith.constant 0 : index
    %226 = arith.index_cast %192 : i32 to index
    %c0_106 = arith.constant 0 : index
    %227 = vector.load %arg5[%c0_105, %226, %c0_106] : memref<1x16x16xf32, #tpu.memory_space<vmem>>, vector<1x2x16xf32>
    %228 = vector.shape_cast %227 : vector<1x2x16xf32> to vector<2x16xf32>
    %229 = vector.shape_cast %223 : vector<2x16xf32> to vector<1x2x16xf32>
    tpu.vector_store %arg5[%c0_105, %226, %c0_106], %229 {strides = array<i32>} : memref<1x16x16xf32, #tpu.memory_space<vmem>>, vector<1x2x16xf32>,
    %c5_i32 = arith.constant 5 : i32
    %c2_i32_107 = arith.constant 2 : i32
    %230 = arith.muli %c2_i32_107, %c5_i32 : i32
    %c7_i32_108 = arith.constant 7 : i32
    %231 = arith.subi %c7_i32_108, %230 : i32
    %232 = arith.muli %arg0, %231 : i32
    %233 = arith.addi %c5_i32, %232 : i32
    %c2_i32_109 = arith.constant 2 : i32
    %234 = arith.muli %233, %c2_i32_109 : i32
    %235 = tpu.assume_multiple %234, 2 : i32
    %236 = arith.index_cast %235 : i32 to index
    %c0_110 = arith.constant 0 : index
    %237 = vector.load %arg6[%236, %c0_110] : memref<16x64xf32, #tpu.memory_space<vmem>>, vector<2x64xf32>
    %c0_111 = arith.constant 0 : index
    %c0_112 = arith.constant 0 : index
    %238 = vector.load %arg7[%c0_111, %c0_112] : memref<2x16xf32, #tpu.memory_space<vmem>>, vector<2x16xf32>
    %cst_113 = arith.constant dense<0.000000e+00> : vector<2x64xf32>
    %239 = tpu.matmul %238, %14, %cst_113 {dimension_numbers = #tpu.dot_dimension_numbers<[1], [0], [0], [1], [0, 0, 1, 1], [], []>} : vector<2x16xf32>, vector<16x64xf32>, vector<2x64xf32> -> vector<2x64xf32>
    %240 = arith.addf %237, %239 : vector<2x64xf32>
    %241 = vector.extract_strided_slice %240 {offsets = [0, 0], sizes = [2, 16], strides = [1, 1]} : vector<2x64xf32> to vector<2x16xf32>
    %242 = arith.negf %241 : vector<2x16xf32>
    %243 = math.exp %242 : vector<2x16xf32>
    %cst_114 = arith.constant 1.000000e+00 : f32
    %244 = vector.broadcast %cst_114 : f32 to vector<2x16xf32>
    %245 = arith.addf %244, %243 : vector<2x16xf32>
    %246 = arith.divf %244, %245 : vector<2x16xf32>
    %247 = vector.extract_strided_slice %240 {offsets = [0, 16], sizes = [2, 16], strides = [1, 1]} : vector<2x64xf32> to vector<2x16xf32>
    %248 = arith.negf %247 : vector<2x16xf32>
    %249 = math.exp %248 : vector<2x16xf32>
    %cst_115 = arith.constant 1.000000e+00 : f32
    %250 = vector.broadcast %cst_115 : f32 to vector<2x16xf32>
    %251 = arith.addf %250, %249 : vector<2x16xf32>
    %252 = arith.divf %250, %251 : vector<2x16xf32>
    %253 = vector.extract_strided_slice %240 {offsets = [0, 32], sizes = [2, 16], strides = [1, 1]} : vector<2x64xf32> to vector<2x16xf32>
    %254 = math.tanh %253 : vector<2x16xf32>
    %255 = vector.extract_strided_slice %240 {offsets = [0, 48], sizes = [2, 16], strides = [1, 1]} : vector<2x64xf32> to vector<2x16xf32>
    %256 = arith.negf %255 : vector<2x16xf32>
    %257 = math.exp %256 : vector<2x16xf32>
    %cst_116 = arith.constant 1.000000e+00 : f32
    %258 = vector.broadcast %cst_116 : f32 to vector<2x16xf32>
    %259 = arith.addf %258, %257 : vector<2x16xf32>
    %260 = arith.divf %258, %259 : vector<2x16xf32>
    %c0_117 = arith.constant 0 : index
    %c0_118 = arith.constant 0 : index
    %261 = vector.load %arg8[%c0_117, %c0_118] : memref<2x16xf32, #tpu.memory_space<vmem>>, vector<2x16xf32>
    %262 = arith.mulf %252, %261 : vector<2x16xf32>
    %263 = arith.mulf %246, %254 : vector<2x16xf32>
    %264 = arith.addf %262, %263 : vector<2x16xf32>
    %265 = math.tanh %264 : vector<2x16xf32>
    %266 = arith.mulf %260, %265 : vector<2x16xf32>
    %c0_119 = arith.constant 0 : index
    %c0_120 = arith.constant 0 : index
    %267 = vector.load %arg8[%c0_119, %c0_120] : memref<2x16xf32, #tpu.memory_space<vmem>>, vector<2x16xf32>
    tpu.vector_store %arg8[%c0_119, %c0_120], %264 {strides = array<i32>} : memref<2x16xf32, #tpu.memory_space<vmem>>, vector<2x16xf32>,
    %c0_121 = arith.constant 0 : index
    %c0_122 = arith.constant 0 : index
    %268 = vector.load %arg7[%c0_121, %c0_122] : memref<2x16xf32, #tpu.memory_space<vmem>>, vector<2x16xf32>
    tpu.vector_store %arg7[%c0_121, %c0_122], %266 {strides = array<i32>} : memref<2x16xf32, #tpu.memory_space<vmem>>, vector<2x16xf32>,
    %c0_123 = arith.constant 0 : index
    %269 = arith.index_cast %235 : i32 to index
    %c0_124 = arith.constant 0 : index
    %270 = vector.load %arg5[%c0_123, %269, %c0_124] : memref<1x16x16xf32, #tpu.memory_space<vmem>>, vector<1x2x16xf32>
    %271 = vector.shape_cast %270 : vector<1x2x16xf32> to vector<2x16xf32>
    %272 = vector.shape_cast %266 : vector<2x16xf32> to vector<1x2x16xf32>
    tpu.vector_store %arg5[%c0_123, %269, %c0_124], %272 {strides = array<i32>} : memref<1x16x16xf32, #tpu.memory_space<vmem>>, vector<1x2x16xf32>,
    %c6_i32 = arith.constant 6 : i32
    %c2_i32_125 = arith.constant 2 : i32
    %273 = arith.muli %c2_i32_125, %c6_i32 : i32
    %c7_i32_126 = arith.constant 7 : i32
    %274 = arith.subi %c7_i32_126, %273 : i32
    %275 = arith.muli %arg0, %274 : i32
    %276 = arith.addi %c6_i32, %275 : i32
    %c2_i32_127 = arith.constant 2 : i32
    %277 = arith.muli %276, %c2_i32_127 : i32
    %278 = tpu.assume_multiple %277, 2 : i32
    %279 = arith.index_cast %278 : i32 to index
    %c0_128 = arith.constant 0 : index
    %280 = vector.load %arg6[%279, %c0_128] : memref<16x64xf32, #tpu.memory_space<vmem>>, vector<2x64xf32>
    %c0_129 = arith.constant 0 : index
    %c0_130 = arith.constant 0 : index
    %281 = vector.load %arg7[%c0_129, %c0_130] : memref<2x16xf32, #tpu.memory_space<vmem>>, vector<2x16xf32>
    %cst_131 = arith.constant dense<0.000000e+00> : vector<2x64xf32>
    %282 = tpu.matmul %281, %14, %cst_131 {dimension_numbers = #tpu.dot_dimension_numbers<[1], [0], [0], [1], [0, 0, 1, 1], [], []>} : vector<2x16xf32>, vector<16x64xf32>, vector<2x64xf32> -> vector<2x64xf32>
    %283 = arith.addf %280, %282 : vector<2x64xf32>
    %284 = vector.extract_strided_slice %283 {offsets = [0, 0], sizes = [2, 16], strides = [1, 1]} : vector<2x64xf32> to vector<2x16xf32>
    %285 = arith.negf %284 : vector<2x16xf32>
    %286 = math.exp %285 : vector<2x16xf32>
    %cst_132 = arith.constant 1.000000e+00 : f32
    %287 = vector.broadcast %cst_132 : f32 to vector<2x16xf32>
    %288 = arith.addf %287, %286 : vector<2x16xf32>
    %289 = arith.divf %287, %288 : vector<2x16xf32>
    %290 = vector.extract_strided_slice %283 {offsets = [0, 16], sizes = [2, 16], strides = [1, 1]} : vector<2x64xf32> to vector<2x16xf32>
    %291 = arith.negf %290 : vector<2x16xf32>
    %292 = math.exp %291 : vector<2x16xf32>
    %cst_133 = arith.constant 1.000000e+00 : f32
    %293 = vector.broadcast %cst_133 : f32 to vector<2x16xf32>
    %294 = arith.addf %293, %292 : vector<2x16xf32>
    %295 = arith.divf %293, %294 : vector<2x16xf32>
    %296 = vector.extract_strided_slice %283 {offsets = [0, 32], sizes = [2, 16], strides = [1, 1]} : vector<2x64xf32> to vector<2x16xf32>
    %297 = math.tanh %296 : vector<2x16xf32>
    %298 = vector.extract_strided_slice %283 {offsets = [0, 48], sizes = [2, 16], strides = [1, 1]} : vector<2x64xf32> to vector<2x16xf32>
    %299 = arith.negf %298 : vector<2x16xf32>
    %300 = math.exp %299 : vector<2x16xf32>
    %cst_134 = arith.constant 1.000000e+00 : f32
    %301 = vector.broadcast %cst_134 : f32 to vector<2x16xf32>
    %302 = arith.addf %301, %300 : vector<2x16xf32>
    %303 = arith.divf %301, %302 : vector<2x16xf32>
    %c0_135 = arith.constant 0 : index
    %c0_136 = arith.constant 0 : index
    %304 = vector.load %arg8[%c0_135, %c0_136] : memref<2x16xf32, #tpu.memory_space<vmem>>, vector<2x16xf32>
    %305 = arith.mulf %295, %304 : vector<2x16xf32>
    %306 = arith.mulf %289, %297 : vector<2x16xf32>
    %307 = arith.addf %305, %306 : vector<2x16xf32>
    %308 = math.tanh %307 : vector<2x16xf32>
    %309 = arith.mulf %303, %308 : vector<2x16xf32>
    %c0_137 = arith.constant 0 : index
    %c0_138 = arith.constant 0 : index
    %310 = vector.load %arg8[%c0_137, %c0_138] : memref<2x16xf32, #tpu.memory_space<vmem>>, vector<2x16xf32>
    tpu.vector_store %arg8[%c0_137, %c0_138], %307 {strides = array<i32>} : memref<2x16xf32, #tpu.memory_space<vmem>>, vector<2x16xf32>,
    %c0_139 = arith.constant 0 : index
    %c0_140 = arith.constant 0 : index
    %311 = vector.load %arg7[%c0_139, %c0_140] : memref<2x16xf32, #tpu.memory_space<vmem>>, vector<2x16xf32>
    tpu.vector_store %arg7[%c0_139, %c0_140], %309 {strides = array<i32>} : memref<2x16xf32, #tpu.memory_space<vmem>>, vector<2x16xf32>,
    %c0_141 = arith.constant 0 : index
    %312 = arith.index_cast %278 : i32 to index
    %c0_142 = arith.constant 0 : index
    %313 = vector.load %arg5[%c0_141, %312, %c0_142] : memref<1x16x16xf32, #tpu.memory_space<vmem>>, vector<1x2x16xf32>
    %314 = vector.shape_cast %313 : vector<1x2x16xf32> to vector<2x16xf32>
    %315 = vector.shape_cast %309 : vector<2x16xf32> to vector<1x2x16xf32>
    tpu.vector_store %arg5[%c0_141, %312, %c0_142], %315 {strides = array<i32>} : memref<1x16x16xf32, #tpu.memory_space<vmem>>, vector<1x2x16xf32>,
    %c7_i32_143 = arith.constant 7 : i32
    %c2_i32_144 = arith.constant 2 : i32
    %316 = arith.muli %c2_i32_144, %c7_i32_143 : i32
    %c7_i32_145 = arith.constant 7 : i32
    %317 = arith.subi %c7_i32_145, %316 : i32
    %318 = arith.muli %arg0, %317 : i32
    %319 = arith.addi %c7_i32_143, %318 : i32
    %c2_i32_146 = arith.constant 2 : i32
    %320 = arith.muli %319, %c2_i32_146 : i32
    %321 = tpu.assume_multiple %320, 2 : i32
    %322 = arith.index_cast %321 : i32 to index
    %c0_147 = arith.constant 0 : index
    %323 = vector.load %arg6[%322, %c0_147] : memref<16x64xf32, #tpu.memory_space<vmem>>, vector<2x64xf32>
    %c0_148 = arith.constant 0 : index
    %c0_149 = arith.constant 0 : index
    %324 = vector.load %arg7[%c0_148, %c0_149] : memref<2x16xf32, #tpu.memory_space<vmem>>, vector<2x16xf32>
    %cst_150 = arith.constant dense<0.000000e+00> : vector<2x64xf32>
    %325 = tpu.matmul %324, %14, %cst_150 {dimension_numbers = #tpu.dot_dimension_numbers<[1], [0], [0], [1], [0, 0, 1, 1], [], []>} : vector<2x16xf32>, vector<16x64xf32>, vector<2x64xf32> -> vector<2x64xf32>
    %326 = arith.addf %323, %325 : vector<2x64xf32>
    %327 = vector.extract_strided_slice %326 {offsets = [0, 0], sizes = [2, 16], strides = [1, 1]} : vector<2x64xf32> to vector<2x16xf32>
    %328 = arith.negf %327 : vector<2x16xf32>
    %329 = math.exp %328 : vector<2x16xf32>
    %cst_151 = arith.constant 1.000000e+00 : f32
    %330 = vector.broadcast %cst_151 : f32 to vector<2x16xf32>
    %331 = arith.addf %330, %329 : vector<2x16xf32>
    %332 = arith.divf %330, %331 : vector<2x16xf32>
    %333 = vector.extract_strided_slice %326 {offsets = [0, 16], sizes = [2, 16], strides = [1, 1]} : vector<2x64xf32> to vector<2x16xf32>
    %334 = arith.negf %333 : vector<2x16xf32>
    %335 = math.exp %334 : vector<2x16xf32>
    %cst_152 = arith.constant 1.000000e+00 : f32
    %336 = vector.broadcast %cst_152 : f32 to vector<2x16xf32>
    %337 = arith.addf %336, %335 : vector<2x16xf32>
    %338 = arith.divf %336, %337 : vector<2x16xf32>
    %339 = vector.extract_strided_slice %326 {offsets = [0, 32], sizes = [2, 16], strides = [1, 1]} : vector<2x64xf32> to vector<2x16xf32>
    %340 = math.tanh %339 : vector<2x16xf32>
    %341 = vector.extract_strided_slice %326 {offsets = [0, 48], sizes = [2, 16], strides = [1, 1]} : vector<2x64xf32> to vector<2x16xf32>
    %342 = arith.negf %341 : vector<2x16xf32>
    %343 = math.exp %342 : vector<2x16xf32>
    %cst_153 = arith.constant 1.000000e+00 : f32
    %344 = vector.broadcast %cst_153 : f32 to vector<2x16xf32>
    %345 = arith.addf %344, %343 : vector<2x16xf32>
    %346 = arith.divf %344, %345 : vector<2x16xf32>
    %c0_154 = arith.constant 0 : index
    %c0_155 = arith.constant 0 : index
    %347 = vector.load %arg8[%c0_154, %c0_155] : memref<2x16xf32, #tpu.memory_space<vmem>>, vector<2x16xf32>
    %348 = arith.mulf %338, %347 : vector<2x16xf32>
    %349 = arith.mulf %332, %340 : vector<2x16xf32>
    %350 = arith.addf %348, %349 : vector<2x16xf32>
    %351 = math.tanh %350 : vector<2x16xf32>
    %352 = arith.mulf %346, %351 : vector<2x16xf32>
    %c0_156 = arith.constant 0 : index
    %c0_157 = arith.constant 0 : index
    %353 = vector.load %arg8[%c0_156, %c0_157] : memref<2x16xf32, #tpu.memory_space<vmem>>, vector<2x16xf32>
    tpu.vector_store %arg8[%c0_156, %c0_157], %350 {strides = array<i32>} : memref<2x16xf32, #tpu.memory_space<vmem>>, vector<2x16xf32>,
    %c0_158 = arith.constant 0 : index
    %c0_159 = arith.constant 0 : index
    %354 = vector.load %arg7[%c0_158, %c0_159] : memref<2x16xf32, #tpu.memory_space<vmem>>, vector<2x16xf32>
    tpu.vector_store %arg7[%c0_158, %c0_159], %352 {strides = array<i32>} : memref<2x16xf32, #tpu.memory_space<vmem>>, vector<2x16xf32>,
    %c0_160 = arith.constant 0 : index
    %355 = arith.index_cast %321 : i32 to index
    %c0_161 = arith.constant 0 : index
    %356 = vector.load %arg5[%c0_160, %355, %c0_161] : memref<1x16x16xf32, #tpu.memory_space<vmem>>, vector<1x2x16xf32>
    %357 = vector.shape_cast %356 : vector<1x2x16xf32> to vector<2x16xf32>
    %358 = vector.shape_cast %352 : vector<2x16xf32> to vector<1x2x16xf32>
    tpu.vector_store %arg5[%c0_160, %355, %c0_161], %358 {strides = array<i32>} : memref<1x16x16xf32, #tpu.memory_space<vmem>>, vector<1x2x16xf32>,
    %c8_i32 = arith.constant 8 : i32
    return
  }
  func.func @transform_0(%arg0: i32) -> (i32, i32) {
    %c0_i32 = arith.constant 0 : i32
    %c0_i32_0 = arith.constant 0 : i32
    %c0_i32_1 = arith.constant 0 : i32
    return %c0_i32, %c0_i32_0 : i32, i32
  }
  func.func @transform_1(%arg0: i32) -> (i32, i32, i32) {
    %c0_i32 = arith.constant 0 : i32
    %c0_i32_0 = arith.constant 0 : i32
    %c0_i32_1 = arith.constant 0 : i32
    return %arg0, %c0_i32, %c0_i32_0 : i32, i32, i32
  }
  func.func @transform_2(%arg0: i32) -> (i32, i32, i32) {
    %c0_i32 = arith.constant 0 : i32
    %c0_i32_0 = arith.constant 0 : i32
    %c0_i32_1 = arith.constant 0 : i32
    return %arg0, %c0_i32, %c0_i32_0 : i32, i32, i32
  }
  func.func @transform_3(%arg0: i32) -> (i32, i32, i32) {
    %c0_i32 = arith.constant 0 : i32
    %c0_i32_0 = arith.constant 0 : i32
    %c0_i32_1 = arith.constant 0 : i32
    return %arg0, %c0_i32, %c0_i32_0 : i32, i32, i32
  }
  func.func @transform_4(%arg0: i32) -> (i32, i32, i32) {
    %c0_i32 = arith.constant 0 : i32
    %c0_i32_0 = arith.constant 0 : i32
    %c0_i32_1 = arith.constant 0 : i32
    return %arg0, %c0_i32, %c0_i32_0 : i32, i32, i32
  }
}

module attributes {stable_mosaic.version = 11 : i64} {
  func.func @_bilstm_dir_kernel(%arg0: i32, %arg1: memref<16x32xf32, #tpu.memory_space<vmem>>, %arg2: memref<1x32x64xf32, #tpu.memory_space<vmem>>, %arg3: memref<1x16x64xf32, #tpu.memory_space<vmem>>, %arg4: memref<1x1x64xf32, #tpu.memory_space<vmem>>, %arg5: memref<1x16x16xf32, #tpu.memory_space<vmem>>, %arg6: memref<16x64xf32, #tpu.memory_space<vmem>>, %arg7: memref<2x16xf32, #tpu.memory_space<vmem>>, %arg8: memref<2x16xf32, #tpu.memory_space<vmem>>) attributes {dimension_semantics = [#tpu.dimension_semantics<parallel>], iteration_bounds = array<i64: 2>, scalar_prefetch = 0 : i64, scratch_operands = 3 : i64, tpu.core_type = #tpu.core_type<tc>, window_params = [{pipeline_mode = #tpu.pipeline_mode<synchronous>, transform_indices = @transform_0, window_bounds = array<i64: 16, 32>}, {transform_indices = @transform_1, window_bounds = array<i64: 1, 32, 64>}, {transform_indices = @transform_2, window_bounds = array<i64: 1, 16, 64>}, {transform_indices = @transform_3, window_bounds = array<i64: 1, 1, 64>}, {transform_indices = @transform_4, window_bounds = array<i64: 1, 16, 16>}]} {
    %c0 = arith.constant 0 : index
    %c0_0 = arith.constant 0 : index
    %0 = vector.load %arg1[%c0, %c0_0] : memref<16x32xf32, #tpu.memory_space<vmem>>, vector<16x32xf32>
    %c0_1 = arith.constant 0 : index
    %c0_2 = arith.constant 0 : index
    %c0_3 = arith.constant 0 : index
    %1 = vector.load %arg2[%c0_1, %c0_2, %c0_3] : memref<1x32x64xf32, #tpu.memory_space<vmem>>, vector<1x32x64xf32>
    %2 = vector.shape_cast %1 : vector<1x32x64xf32> to vector<32x64xf32>
    %cst = arith.constant dense<0.000000e+00> : vector<16x64xf32>
    %3 = tpu.matmul %0, %2, %cst {dimension_numbers = #tpu.dot_dimension_numbers<[1], [0], [0], [1], [0, 0, 1, 1], [], []>} : vector<16x32xf32>, vector<32x64xf32>, vector<16x64xf32> -> vector<16x64xf32>
    %c0_4 = arith.constant 0 : index
    %c0_5 = arith.constant 0 : index
    %c0_6 = arith.constant 0 : index
    %4 = vector.load %arg4[%c0_4, %c0_5, %c0_6] : memref<1x1x64xf32, #tpu.memory_space<vmem>>, vector<1x1x64xf32>
    %5 = vector.shape_cast %4 : vector<1x1x64xf32> to vector<1x64xf32>
    %6 = vector.broadcast %5 : vector<1x64xf32> to vector<16x64xf32>
    %7 = arith.addf %3, %6 : vector<16x64xf32>
    %c0_7 = arith.constant 0 : index
    %c0_8 = arith.constant 0 : index
    %8 = vector.load %arg6[%c0_7, %c0_8] : memref<16x64xf32, #tpu.memory_space<vmem>>, vector<16x64xf32>
    tpu.vector_store %arg6[%c0_7, %c0_8], %7 {strides = array<i32>} : memref<16x64xf32, #tpu.memory_space<vmem>>, vector<16x64xf32>,
    %cst_9 = arith.constant 0.000000e+00 : f32
    %9 = vector.broadcast %cst_9 : f32 to vector<2x16xf32>
    %c0_10 = arith.constant 0 : index
    %c0_11 = arith.constant 0 : index
    %10 = vector.load %arg7[%c0_10, %c0_11] : memref<2x16xf32, #tpu.memory_space<vmem>>, vector<2x16xf32>
    tpu.vector_store %arg7[%c0_10, %c0_11], %9 {strides = array<i32>} : memref<2x16xf32, #tpu.memory_space<vmem>>, vector<2x16xf32>,
    %cst_12 = arith.constant 0.000000e+00 : f32
    %11 = vector.broadcast %cst_12 : f32 to vector<2x16xf32>
    %c0_13 = arith.constant 0 : index
    %c0_14 = arith.constant 0 : index
    %12 = vector.load %arg8[%c0_13, %c0_14] : memref<2x16xf32, #tpu.memory_space<vmem>>, vector<2x16xf32>
    tpu.vector_store %arg8[%c0_13, %c0_14], %11 {strides = array<i32>} : memref<2x16xf32, #tpu.memory_space<vmem>>, vector<2x16xf32>,
    %c0_15 = arith.constant 0 : index
    %c0_16 = arith.constant 0 : index
    %c0_17 = arith.constant 0 : index
    %13 = vector.load %arg3[%c0_15, %c0_16, %c0_17] : memref<1x16x64xf32, #tpu.memory_space<vmem>>, vector<1x16x64xf32>
    %14 = vector.shape_cast %13 : vector<1x16x64xf32> to vector<16x64xf32>
    %c0_i32 = arith.constant 0 : i32
    %c2_i32 = arith.constant 2 : i32
    %15 = arith.muli %c2_i32, %c0_i32 : i32
    %c7_i32 = arith.constant 7 : i32
    %16 = arith.subi %c7_i32, %15 : i32
    %17 = arith.muli %arg0, %16 : i32
    %18 = arith.addi %c0_i32, %17 : i32
    %c2_i32_18 = arith.constant 2 : i32
    %19 = arith.muli %18, %c2_i32_18 : i32
    %20 = tpu.assume_multiple %19, 2 : i32
    %21 = arith.index_cast %20 : i32 to index
    %c0_19 = arith.constant 0 : index
    %22 = vector.load %arg6[%21, %c0_19] : memref<16x64xf32, #tpu.memory_space<vmem>>, vector<2x64xf32>
    %c0_20 = arith.constant 0 : index
    %c0_21 = arith.constant 0 : index
    %23 = vector.load %arg7[%c0_20, %c0_21] : memref<2x16xf32, #tpu.memory_space<vmem>>, vector<2x16xf32>
    %cst_22 = arith.constant dense<0.000000e+00> : vector<2x64xf32>
    %24 = tpu.matmul %23, %14, %cst_22 {dimension_numbers = #tpu.dot_dimension_numbers<[1], [0], [0], [1], [0, 0, 1, 1], [], []>} : vector<2x16xf32>, vector<16x64xf32>, vector<2x64xf32> -> vector<2x64xf32>
    %25 = arith.addf %22, %24 : vector<2x64xf32>
    %26 = vector.extract_strided_slice %25 {offsets = [0, 0], sizes = [2, 16], strides = [1, 1]} : vector<2x64xf32> to vector<2x16xf32>
    %27 = arith.negf %26 : vector<2x16xf32>
    %28 = math.exp %27 : vector<2x16xf32>
    %cst_23 = arith.constant 1.000000e+00 : f32
    %29 = vector.broadcast %cst_23 : f32 to vector<2x16xf32>
    %30 = arith.addf %29, %28 : vector<2x16xf32>
    %31 = arith.divf %29, %30 : vector<2x16xf32>
    %32 = vector.extract_strided_slice %25 {offsets = [0, 16], sizes = [2, 16], strides = [1, 1]} : vector<2x64xf32> to vector<2x16xf32>
    %33 = arith.negf %32 : vector<2x16xf32>
    %34 = math.exp %33 : vector<2x16xf32>
    %cst_24 = arith.constant 1.000000e+00 : f32
    %35 = vector.broadcast %cst_24 : f32 to vector<2x16xf32>
    %36 = arith.addf %35, %34 : vector<2x16xf32>
    %37 = arith.divf %35, %36 : vector<2x16xf32>
    %38 = vector.extract_strided_slice %25 {offsets = [0, 32], sizes = [2, 16], strides = [1, 1]} : vector<2x64xf32> to vector<2x16xf32>
    %39 = math.tanh %38 : vector<2x16xf32>
    %40 = vector.extract_strided_slice %25 {offsets = [0, 48], sizes = [2, 16], strides = [1, 1]} : vector<2x64xf32> to vector<2x16xf32>
    %41 = arith.negf %40 : vector<2x16xf32>
    %42 = math.exp %41 : vector<2x16xf32>
    %cst_25 = arith.constant 1.000000e+00 : f32
    %43 = vector.broadcast %cst_25 : f32 to vector<2x16xf32>
    %44 = arith.addf %43, %42 : vector<2x16xf32>
    %45 = arith.divf %43, %44 : vector<2x16xf32>
    %c0_26 = arith.constant 0 : index
    %c0_27 = arith.constant 0 : index
    %46 = vector.load %arg8[%c0_26, %c0_27] : memref<2x16xf32, #tpu.memory_space<vmem>>, vector<2x16xf32>
    %47 = arith.mulf %37, %46 : vector<2x16xf32>
    %48 = arith.mulf %31, %39 : vector<2x16xf32>
    %49 = arith.addf %47, %48 : vector<2x16xf32>
    %50 = math.tanh %49 : vector<2x16xf32>
    %51 = arith.mulf %45, %50 : vector<2x16xf32>
    %c0_28 = arith.constant 0 : index
    %c0_29 = arith.constant 0 : index
    %52 = vector.load %arg8[%c0_28, %c0_29] : memref<2x16xf32, #tpu.memory_space<vmem>>, vector<2x16xf32>
    tpu.vector_store %arg8[%c0_28, %c0_29], %49 {strides = array<i32>} : memref<2x16xf32, #tpu.memory_space<vmem>>, vector<2x16xf32>,
    %c0_30 = arith.constant 0 : index
    %c0_31 = arith.constant 0 : index
    %53 = vector.load %arg7[%c0_30, %c0_31] : memref<2x16xf32, #tpu.memory_space<vmem>>, vector<2x16xf32>
    tpu.vector_store %arg7[%c0_30, %c0_31], %51 {strides = array<i32>} : memref<2x16xf32, #tpu.memory_space<vmem>>, vector<2x16xf32>,
    %c0_32 = arith.constant 0 : index
    %54 = arith.index_cast %20 : i32 to index
    %c0_33 = arith.constant 0 : index
    %55 = vector.load %arg5[%c0_32, %54, %c0_33] : memref<1x16x16xf32, #tpu.memory_space<vmem>>, vector<1x2x16xf32>
    %56 = vector.shape_cast %55 : vector<1x2x16xf32> to vector<2x16xf32>
    %57 = vector.shape_cast %51 : vector<2x16xf32> to vector<1x2x16xf32>
    tpu.vector_store %arg5[%c0_32, %54, %c0_33], %57 {strides = array<i32>} : memref<1x16x16xf32, #tpu.memory_space<vmem>>, vector<1x2x16xf32>,
    %c1_i32 = arith.constant 1 : i32
    %c2_i32_34 = arith.constant 2 : i32
    %58 = arith.muli %c2_i32_34, %c1_i32 : i32
    %c7_i32_35 = arith.constant 7 : i32
    %59 = arith.subi %c7_i32_35, %58 : i32
    %60 = arith.muli %arg0, %59 : i32
    %61 = arith.addi %c1_i32, %60 : i32
    %c2_i32_36 = arith.constant 2 : i32
    %62 = arith.muli %61, %c2_i32_36 : i32
    %63 = tpu.assume_multiple %62, 2 : i32
    %64 = arith.index_cast %63 : i32 to index
    %c0_37 = arith.constant 0 : index
    %65 = vector.load %arg6[%64, %c0_37] : memref<16x64xf32, #tpu.memory_space<vmem>>, vector<2x64xf32>
    %c0_38 = arith.constant 0 : index
    %c0_39 = arith.constant 0 : index
    %66 = vector.load %arg7[%c0_38, %c0_39] : memref<2x16xf32, #tpu.memory_space<vmem>>, vector<2x16xf32>
    %cst_40 = arith.constant dense<0.000000e+00> : vector<2x64xf32>
    %67 = tpu.matmul %66, %14, %cst_40 {dimension_numbers = #tpu.dot_dimension_numbers<[1], [0], [0], [1], [0, 0, 1, 1], [], []>} : vector<2x16xf32>, vector<16x64xf32>, vector<2x64xf32> -> vector<2x64xf32>
    %68 = arith.addf %65, %67 : vector<2x64xf32>
    %69 = vector.extract_strided_slice %68 {offsets = [0, 0], sizes = [2, 16], strides = [1, 1]} : vector<2x64xf32> to vector<2x16xf32>
    %70 = arith.negf %69 : vector<2x16xf32>
    %71 = math.exp %70 : vector<2x16xf32>
    %cst_41 = arith.constant 1.000000e+00 : f32
    %72 = vector.broadcast %cst_41 : f32 to vector<2x16xf32>
    %73 = arith.addf %72, %71 : vector<2x16xf32>
    %74 = arith.divf %72, %73 : vector<2x16xf32>
    %75 = vector.extract_strided_slice %68 {offsets = [0, 16], sizes = [2, 16], strides = [1, 1]} : vector<2x64xf32> to vector<2x16xf32>
    %76 = arith.negf %75 : vector<2x16xf32>
    %77 = math.exp %76 : vector<2x16xf32>
    %cst_42 = arith.constant 1.000000e+00 : f32
    %78 = vector.broadcast %cst_42 : f32 to vector<2x16xf32>
    %79 = arith.addf %78, %77 : vector<2x16xf32>
    %80 = arith.divf %78, %79 : vector<2x16xf32>
    %81 = vector.extract_strided_slice %68 {offsets = [0, 32], sizes = [2, 16], strides = [1, 1]} : vector<2x64xf32> to vector<2x16xf32>
    %82 = math.tanh %81 : vector<2x16xf32>
    %83 = vector.extract_strided_slice %68 {offsets = [0, 48], sizes = [2, 16], strides = [1, 1]} : vector<2x64xf32> to vector<2x16xf32>
    %84 = arith.negf %83 : vector<2x16xf32>
    %85 = math.exp %84 : vector<2x16xf32>
    %cst_43 = arith.constant 1.000000e+00 : f32
    %86 = vector.broadcast %cst_43 : f32 to vector<2x16xf32>
    %87 = arith.addf %86, %85 : vector<2x16xf32>
    %88 = arith.divf %86, %87 : vector<2x16xf32>
    %c0_44 = arith.constant 0 : index
    %c0_45 = arith.constant 0 : index
    %89 = vector.load %arg8[%c0_44, %c0_45] : memref<2x16xf32, #tpu.memory_space<vmem>>, vector<2x16xf32>
    %90 = arith.mulf %80, %89 : vector<2x16xf32>
    %91 = arith.mulf %74, %82 : vector<2x16xf32>
    %92 = arith.addf %90, %91 : vector<2x16xf32>
    %93 = math.tanh %92 : vector<2x16xf32>
    %94 = arith.mulf %88, %93 : vector<2x16xf32>
    %c0_46 = arith.constant 0 : index
    %c0_47 = arith.constant 0 : index
    %95 = vector.load %arg8[%c0_46, %c0_47] : memref<2x16xf32, #tpu.memory_space<vmem>>, vector<2x16xf32>
    tpu.vector_store %arg8[%c0_46, %c0_47], %92 {strides = array<i32>} : memref<2x16xf32, #tpu.memory_space<vmem>>, vector<2x16xf32>,
    %c0_48 = arith.constant 0 : index
    %c0_49 = arith.constant 0 : index
    %96 = vector.load %arg7[%c0_48, %c0_49] : memref<2x16xf32, #tpu.memory_space<vmem>>, vector<2x16xf32>
    tpu.vector_store %arg7[%c0_48, %c0_49], %94 {strides = array<i32>} : memref<2x16xf32, #tpu.memory_space<vmem>>, vector<2x16xf32>,
    %c0_50 = arith.constant 0 : index
    %97 = arith.index_cast %63 : i32 to index
    %c0_51 = arith.constant 0 : index
    %98 = vector.load %arg5[%c0_50, %97, %c0_51] : memref<1x16x16xf32, #tpu.memory_space<vmem>>, vector<1x2x16xf32>
    %99 = vector.shape_cast %98 : vector<1x2x16xf32> to vector<2x16xf32>
    %100 = vector.shape_cast %94 : vector<2x16xf32> to vector<1x2x16xf32>
    tpu.vector_store %arg5[%c0_50, %97, %c0_51], %100 {strides = array<i32>} : memref<1x16x16xf32, #tpu.memory_space<vmem>>, vector<1x2x16xf32>,
    %c2_i32_52 = arith.constant 2 : i32
    %c2_i32_53 = arith.constant 2 : i32
    %101 = arith.muli %c2_i32_53, %c2_i32_52 : i32
    %c7_i32_54 = arith.constant 7 : i32
    %102 = arith.subi %c7_i32_54, %101 : i32
    %103 = arith.muli %arg0, %102 : i32
    %104 = arith.addi %c2_i32_52, %103 : i32
    %c2_i32_55 = arith.constant 2 : i32
    %105 = arith.muli %104, %c2_i32_55 : i32
    %106 = tpu.assume_multiple %105, 2 : i32
    %107 = arith.index_cast %106 : i32 to index
    %c0_56 = arith.constant 0 : index
    %108 = vector.load %arg6[%107, %c0_56] : memref<16x64xf32, #tpu.memory_space<vmem>>, vector<2x64xf32>
    %c0_57 = arith.constant 0 : index
    %c0_58 = arith.constant 0 : index
    %109 = vector.load %arg7[%c0_57, %c0_58] : memref<2x16xf32, #tpu.memory_space<vmem>>, vector<2x16xf32>
    %cst_59 = arith.constant dense<0.000000e+00> : vector<2x64xf32>
    %110 = tpu.matmul %109, %14, %cst_59 {dimension_numbers = #tpu.dot_dimension_numbers<[1], [0], [0], [1], [0, 0, 1, 1], [], []>} : vector<2x16xf32>, vector<16x64xf32>, vector<2x64xf32> -> vector<2x64xf32>
    %111 = arith.addf %108, %110 : vector<2x64xf32>
    %112 = vector.extract_strided_slice %111 {offsets = [0, 0], sizes = [2, 16], strides = [1, 1]} : vector<2x64xf32> to vector<2x16xf32>
    %113 = arith.negf %112 : vector<2x16xf32>
    %114 = math.exp %113 : vector<2x16xf32>
    %cst_60 = arith.constant 1.000000e+00 : f32
    %115 = vector.broadcast %cst_60 : f32 to vector<2x16xf32>
    %116 = arith.addf %115, %114 : vector<2x16xf32>
    %117 = arith.divf %115, %116 : vector<2x16xf32>
    %118 = vector.extract_strided_slice %111 {offsets = [0, 16], sizes = [2, 16], strides = [1, 1]} : vector<2x64xf32> to vector<2x16xf32>
    %119 = arith.negf %118 : vector<2x16xf32>
    %120 = math.exp %119 : vector<2x16xf32>
    %cst_61 = arith.constant 1.000000e+00 : f32
    %121 = vector.broadcast %cst_61 : f32 to vector<2x16xf32>
    %122 = arith.addf %121, %120 : vector<2x16xf32>
    %123 = arith.divf %121, %122 : vector<2x16xf32>
    %124 = vector.extract_strided_slice %111 {offsets = [0, 32], sizes = [2, 16], strides = [1, 1]} : vector<2x64xf32> to vector<2x16xf32>
    %125 = math.tanh %124 : vector<2x16xf32>
    %126 = vector.extract_strided_slice %111 {offsets = [0, 48], sizes = [2, 16], strides = [1, 1]} : vector<2x64xf32> to vector<2x16xf32>
    %127 = arith.negf %126 : vector<2x16xf32>
    %128 = math.exp %127 : vector<2x16xf32>
    %cst_62 = arith.constant 1.000000e+00 : f32
    %129 = vector.broadcast %cst_62 : f32 to vector<2x16xf32>
    %130 = arith.addf %129, %128 : vector<2x16xf32>
    %131 = arith.divf %129, %130 : vector<2x16xf32>
    %c0_63 = arith.constant 0 : index
    %c0_64 = arith.constant 0 : index
    %132 = vector.load %arg8[%c0_63, %c0_64] : memref<2x16xf32, #tpu.memory_space<vmem>>, vector<2x16xf32>
    %133 = arith.mulf %123, %132 : vector<2x16xf32>
    %134 = arith.mulf %117, %125 : vector<2x16xf32>
    %135 = arith.addf %133, %134 : vector<2x16xf32>
    %136 = math.tanh %135 : vector<2x16xf32>
    %137 = arith.mulf %131, %136 : vector<2x16xf32>
    %c0_65 = arith.constant 0 : index
    %c0_66 = arith.constant 0 : index
    %138 = vector.load %arg8[%c0_65, %c0_66] : memref<2x16xf32, #tpu.memory_space<vmem>>, vector<2x16xf32>
    tpu.vector_store %arg8[%c0_65, %c0_66], %135 {strides = array<i32>} : memref<2x16xf32, #tpu.memory_space<vmem>>, vector<2x16xf32>,
    %c0_67 = arith.constant 0 : index
    %c0_68 = arith.constant 0 : index
    %139 = vector.load %arg7[%c0_67, %c0_68] : memref<2x16xf32, #tpu.memory_space<vmem>>, vector<2x16xf32>
    tpu.vector_store %arg7[%c0_67, %c0_68], %137 {strides = array<i32>} : memref<2x16xf32, #tpu.memory_space<vmem>>, vector<2x16xf32>,
    %c0_69 = arith.constant 0 : index
    %140 = arith.index_cast %106 : i32 to index
    %c0_70 = arith.constant 0 : index
    %141 = vector.load %arg5[%c0_69, %140, %c0_70] : memref<1x16x16xf32, #tpu.memory_space<vmem>>, vector<1x2x16xf32>
    %142 = vector.shape_cast %141 : vector<1x2x16xf32> to vector<2x16xf32>
    %143 = vector.shape_cast %137 : vector<2x16xf32> to vector<1x2x16xf32>
    tpu.vector_store %arg5[%c0_69, %140, %c0_70], %143 {strides = array<i32>} : memref<1x16x16xf32, #tpu.memory_space<vmem>>, vector<1x2x16xf32>,
    %c3_i32 = arith.constant 3 : i32
    %c2_i32_71 = arith.constant 2 : i32
    %144 = arith.muli %c2_i32_71, %c3_i32 : i32
    %c7_i32_72 = arith.constant 7 : i32
    %145 = arith.subi %c7_i32_72, %144 : i32
    %146 = arith.muli %arg0, %145 : i32
    %147 = arith.addi %c3_i32, %146 : i32
    %c2_i32_73 = arith.constant 2 : i32
    %148 = arith.muli %147, %c2_i32_73 : i32
    %149 = tpu.assume_multiple %148, 2 : i32
    %150 = arith.index_cast %149 : i32 to index
    %c0_74 = arith.constant 0 : index
    %151 = vector.load %arg6[%150, %c0_74] : memref<16x64xf32, #tpu.memory_space<vmem>>, vector<2x64xf32>
    %c0_75 = arith.constant 0 : index
    %c0_76 = arith.constant 0 : index
    %152 = vector.load %arg7[%c0_75, %c0_76] : memref<2x16xf32, #tpu.memory_space<vmem>>, vector<2x16xf32>
    %cst_77 = arith.constant dense<0.000000e+00> : vector<2x64xf32>
    %153 = tpu.matmul %152, %14, %cst_77 {dimension_numbers = #tpu.dot_dimension_numbers<[1], [0], [0], [1], [0, 0, 1, 1], [], []>} : vector<2x16xf32>, vector<16x64xf32>, vector<2x64xf32> -> vector<2x64xf32>
    %154 = arith.addf %151, %153 : vector<2x64xf32>
    %155 = vector.extract_strided_slice %154 {offsets = [0, 0], sizes = [2, 16], strides = [1, 1]} : vector<2x64xf32> to vector<2x16xf32>
    %156 = arith.negf %155 : vector<2x16xf32>
    %157 = math.exp %156 : vector<2x16xf32>
    %cst_78 = arith.constant 1.000000e+00 : f32
    %158 = vector.broadcast %cst_78 : f32 to vector<2x16xf32>
    %159 = arith.addf %158, %157 : vector<2x16xf32>
    %160 = arith.divf %158, %159 : vector<2x16xf32>
    %161 = vector.extract_strided_slice %154 {offsets = [0, 16], sizes = [2, 16], strides = [1, 1]} : vector<2x64xf32> to vector<2x16xf32>
    %162 = arith.negf %161 : vector<2x16xf32>
    %163 = math.exp %162 : vector<2x16xf32>
    %cst_79 = arith.constant 1.000000e+00 : f32
    %164 = vector.broadcast %cst_79 : f32 to vector<2x16xf32>
    %165 = arith.addf %164, %163 : vector<2x16xf32>
    %166 = arith.divf %164, %165 : vector<2x16xf32>
    %167 = vector.extract_strided_slice %154 {offsets = [0, 32], sizes = [2, 16], strides = [1, 1]} : vector<2x64xf32> to vector<2x16xf32>
    %168 = math.tanh %167 : vector<2x16xf32>
    %169 = vector.extract_strided_slice %154 {offsets = [0, 48], sizes = [2, 16], strides = [1, 1]} : vector<2x64xf32> to vector<2x16xf32>
    %170 = arith.negf %169 : vector<2x16xf32>
    %171 = math.exp %170 : vector<2x16xf32>
    %cst_80 = arith.constant 1.000000e+00 : f32
    %172 = vector.broadcast %cst_80 : f32 to vector<2x16xf32>
    %173 = arith.addf %172, %171 : vector<2x16xf32>
    %174 = arith.divf %172, %173 : vector<2x16xf32>
    %c0_81 = arith.constant 0 : index
    %c0_82 = arith.constant 0 : index
    %175 = vector.load %arg8[%c0_81, %c0_82] : memref<2x16xf32, #tpu.memory_space<vmem>>, vector<2x16xf32>
    %176 = arith.mulf %166, %175 : vector<2x16xf32>
    %177 = arith.mulf %160, %168 : vector<2x16xf32>
    %178 = arith.addf %176, %177 : vector<2x16xf32>
    %179 = math.tanh %178 : vector<2x16xf32>
    %180 = arith.mulf %174, %179 : vector<2x16xf32>
    %c0_83 = arith.constant 0 : index
    %c0_84 = arith.constant 0 : index
    %181 = vector.load %arg8[%c0_83, %c0_84] : memref<2x16xf32, #tpu.memory_space<vmem>>, vector<2x16xf32>
    tpu.vector_store %arg8[%c0_83, %c0_84], %178 {strides = array<i32>} : memref<2x16xf32, #tpu.memory_space<vmem>>, vector<2x16xf32>,
    %c0_85 = arith.constant 0 : index
    %c0_86 = arith.constant 0 : index
    %182 = vector.load %arg7[%c0_85, %c0_86] : memref<2x16xf32, #tpu.memory_space<vmem>>, vector<2x16xf32>
    tpu.vector_store %arg7[%c0_85, %c0_86], %180 {strides = array<i32>} : memref<2x16xf32, #tpu.memory_space<vmem>>, vector<2x16xf32>,
    %c0_87 = arith.constant 0 : index
    %183 = arith.index_cast %149 : i32 to index
    %c0_88 = arith.constant 0 : index
    %184 = vector.load %arg5[%c0_87, %183, %c0_88] : memref<1x16x16xf32, #tpu.memory_space<vmem>>, vector<1x2x16xf32>
    %185 = vector.shape_cast %184 : vector<1x2x16xf32> to vector<2x16xf32>
    %186 = vector.shape_cast %180 : vector<2x16xf32> to vector<1x2x16xf32>
    tpu.vector_store %arg5[%c0_87, %183, %c0_88], %186 {strides = array<i32>} : memref<1x16x16xf32, #tpu.memory_space<vmem>>, vector<1x2x16xf32>,
    %c4_i32 = arith.constant 4 : i32
    %c2_i32_89 = arith.constant 2 : i32
    %187 = arith.muli %c2_i32_89, %c4_i32 : i32
    %c7_i32_90 = arith.constant 7 : i32
    %188 = arith.subi %c7_i32_90, %187 : i32
    %189 = arith.muli %arg0, %188 : i32
    %190 = arith.addi %c4_i32, %189 : i32
    %c2_i32_91 = arith.constant 2 : i32
    %191 = arith.muli %190, %c2_i32_91 : i32
    %192 = tpu.assume_multiple %191, 2 : i32
    %193 = arith.index_cast %192 : i32 to index
    %c0_92 = arith.constant 0 : index
    %194 = vector.load %arg6[%193, %c0_92] : memref<16x64xf32, #tpu.memory_space<vmem>>, vector<2x64xf32>
    %c0_93 = arith.constant 0 : index
    %c0_94 = arith.constant 0 : index
    %195 = vector.load %arg7[%c0_93, %c0_94] : memref<2x16xf32, #tpu.memory_space<vmem>>, vector<2x16xf32>
    %cst_95 = arith.constant dense<0.000000e+00> : vector<2x64xf32>
    %196 = tpu.matmul %195, %14, %cst_95 {dimension_numbers = #tpu.dot_dimension_numbers<[1], [0], [0], [1], [0, 0, 1, 1], [], []>} : vector<2x16xf32>, vector<16x64xf32>, vector<2x64xf32> -> vector<2x64xf32>
    %197 = arith.addf %194, %196 : vector<2x64xf32>
    %198 = vector.extract_strided_slice %197 {offsets = [0, 0], sizes = [2, 16], strides = [1, 1]} : vector<2x64xf32> to vector<2x16xf32>
    %199 = arith.negf %198 : vector<2x16xf32>
    %200 = math.exp %199 : vector<2x16xf32>
    %cst_96 = arith.constant 1.000000e+00 : f32
    %201 = vector.broadcast %cst_96 : f32 to vector<2x16xf32>
    %202 = arith.addf %201, %200 : vector<2x16xf32>
    %203 = arith.divf %201, %202 : vector<2x16xf32>
    %204 = vector.extract_strided_slice %197 {offsets = [0, 16], sizes = [2, 16], strides = [1, 1]} : vector<2x64xf32> to vector<2x16xf32>
    %205 = arith.negf %204 : vector<2x16xf32>
    %206 = math.exp %205 : vector<2x16xf32>
    %cst_97 = arith.constant 1.000000e+00 : f32
    %207 = vector.broadcast %cst_97 : f32 to vector<2x16xf32>
    %208 = arith.addf %207, %206 : vector<2x16xf32>
    %209 = arith.divf %207, %208 : vector<2x16xf32>
    %210 = vector.extract_strided_slice %197 {offsets = [0, 32], sizes = [2, 16], strides = [1, 1]} : vector<2x64xf32> to vector<2x16xf32>
    %211 = math.tanh %210 : vector<2x16xf32>
    %212 = vector.extract_strided_slice %197 {offsets = [0, 48], sizes = [2, 16], strides = [1, 1]} : vector<2x64xf32> to vector<2x16xf32>
    %213 = arith.negf %212 : vector<2x16xf32>
    %214 = math.exp %213 : vector<2x16xf32>
    %cst_98 = arith.constant 1.000000e+00 : f32
    %215 = vector.broadcast %cst_98 : f32 to vector<2x16xf32>
    %216 = arith.addf %215, %214 : vector<2x16xf32>
    %217 = arith.divf %215, %216 : vector<2x16xf32>
    %c0_99 = arith.constant 0 : index
    %c0_100 = arith.constant 0 : index
    %218 = vector.load %arg8[%c0_99, %c0_100] : memref<2x16xf32, #tpu.memory_space<vmem>>, vector<2x16xf32>
    %219 = arith.mulf %209, %218 : vector<2x16xf32>
    %220 = arith.mulf %203, %211 : vector<2x16xf32>
    %221 = arith.addf %219, %220 : vector<2x16xf32>
    %222 = math.tanh %221 : vector<2x16xf32>
    %223 = arith.mulf %217, %222 : vector<2x16xf32>
    %c0_101 = arith.constant 0 : index
    %c0_102 = arith.constant 0 : index
    %224 = vector.load %arg8[%c0_101, %c0_102] : memref<2x16xf32, #tpu.memory_space<vmem>>, vector<2x16xf32>
    tpu.vector_store %arg8[%c0_101, %c0_102], %221 {strides = array<i32>} : memref<2x16xf32, #tpu.memory_space<vmem>>, vector<2x16xf32>,
    %c0_103 = arith.constant 0 : index
    %c0_104 = arith.constant 0 : index
    %225 = vector.load %arg7[%c0_103, %c0_104] : memref<2x16xf32, #tpu.memory_space<vmem>>, vector<2x16xf32>
    tpu.vector_store %arg7[%c0_103, %c0_104], %223 {strides = array<i32>} : memref<2x16xf32, #tpu.memory_space<vmem>>, vector<2x16xf32>,
    %c0_105 = arith.constant 0 : index
    %226 = arith.index_cast %192 : i32 to index
    %c0_106 = arith.constant 0 : index
    %227 = vector.load %arg5[%c0_105, %226, %c0_106] : memref<1x16x16xf32, #tpu.memory_space<vmem>>, vector<1x2x16xf32>
    %228 = vector.shape_cast %227 : vector<1x2x16xf32> to vector<2x16xf32>
    %229 = vector.shape_cast %223 : vector<2x16xf32> to vector<1x2x16xf32>
    tpu.vector_store %arg5[%c0_105, %226, %c0_106], %229 {strides = array<i32>} : memref<1x16x16xf32, #tpu.memory_space<vmem>>, vector<1x2x16xf32>,
    %c5_i32 = arith.constant 5 : i32
    %c2_i32_107 = arith.constant 2 : i32
    %230 = arith.muli %c2_i32_107, %c5_i32 : i32
    %c7_i32_108 = arith.constant 7 : i32
    %231 = arith.subi %c7_i32_108, %230 : i32
    %232 = arith.muli %arg0, %231 : i32
    %233 = arith.addi %c5_i32, %232 : i32
    %c2_i32_109 = arith.constant 2 : i32
    %234 = arith.muli %233, %c2_i32_109 : i32
    %235 = tpu.assume_multiple %234, 2 : i32
    %236 = arith.index_cast %235 : i32 to index
    %c0_110 = arith.constant 0 : index
    %237 = vector.load %arg6[%236, %c0_110] : memref<16x64xf32, #tpu.memory_space<vmem>>, vector<2x64xf32>
    %c0_111 = arith.constant 0 : index
    %c0_112 = arith.constant 0 : index
    %238 = vector.load %arg7[%c0_111, %c0_112] : memref<2x16xf32, #tpu.memory_space<vmem>>, vector<2x16xf32>
    %cst_113 = arith.constant dense<0.000000e+00> : vector<2x64xf32>
    %239 = tpu.matmul %238, %14, %cst_113 {dimension_numbers = #tpu.dot_dimension_numbers<[1], [0], [0], [1], [0, 0, 1, 1], [], []>} : vector<2x16xf32>, vector<16x64xf32>, vector<2x64xf32> -> vector<2x64xf32>
    %240 = arith.addf %237, %239 : vector<2x64xf32>
    %241 = vector.extract_strided_slice %240 {offsets = [0, 0], sizes = [2, 16], strides = [1, 1]} : vector<2x64xf32> to vector<2x16xf32>
    %242 = arith.negf %241 : vector<2x16xf32>
    %243 = math.exp %242 : vector<2x16xf32>
    %cst_114 = arith.constant 1.000000e+00 : f32
    %244 = vector.broadcast %cst_114 : f32 to vector<2x16xf32>
    %245 = arith.addf %244, %243 : vector<2x16xf32>
    %246 = arith.divf %244, %245 : vector<2x16xf32>
    %247 = vector.extract_strided_slice %240 {offsets = [0, 16], sizes = [2, 16], strides = [1, 1]} : vector<2x64xf32> to vector<2x16xf32>
    %248 = arith.negf %247 : vector<2x16xf32>
    %249 = math.exp %248 : vector<2x16xf32>
    %cst_115 = arith.constant 1.000000e+00 : f32
    %250 = vector.broadcast %cst_115 : f32 to vector<2x16xf32>
    %251 = arith.addf %250, %249 : vector<2x16xf32>
    %252 = arith.divf %250, %251 : vector<2x16xf32>
    %253 = vector.extract_strided_slice %240 {offsets = [0, 32], sizes = [2, 16], strides = [1, 1]} : vector<2x64xf32> to vector<2x16xf32>
    %254 = math.tanh %253 : vector<2x16xf32>
    %255 = vector.extract_strided_slice %240 {offsets = [0, 48], sizes = [2, 16], strides = [1, 1]} : vector<2x64xf32> to vector<2x16xf32>
    %256 = arith.negf %255 : vector<2x16xf32>
    %257 = math.exp %256 : vector<2x16xf32>
    %cst_116 = arith.constant 1.000000e+00 : f32
    %258 = vector.broadcast %cst_116 : f32 to vector<2x16xf32>
    %259 = arith.addf %258, %257 : vector<2x16xf32>
    %260 = arith.divf %258, %259 : vector<2x16xf32>
    %c0_117 = arith.constant 0 : index
    %c0_118 = arith.constant 0 : index
    %261 = vector.load %arg8[%c0_117, %c0_118] : memref<2x16xf32, #tpu.memory_space<vmem>>, vector<2x16xf32>
    %262 = arith.mulf %252, %261 : vector<2x16xf32>
    %263 = arith.mulf %246, %254 : vector<2x16xf32>
    %264 = arith.addf %262, %263 : vector<2x16xf32>
    %265 = math.tanh %264 : vector<2x16xf32>
    %266 = arith.mulf %260, %265 : vector<2x16xf32>
    %c0_119 = arith.constant 0 : index
    %c0_120 = arith.constant 0 : index
    %267 = vector.load %arg8[%c0_119, %c0_120] : memref<2x16xf32, #tpu.memory_space<vmem>>, vector<2x16xf32>
    tpu.vector_store %arg8[%c0_119, %c0_120], %264 {strides = array<i32>} : memref<2x16xf32, #tpu.memory_space<vmem>>, vector<2x16xf32>,
    %c0_121 = arith.constant 0 : index
    %c0_122 = arith.constant 0 : index
    %268 = vector.load %arg7[%c0_121, %c0_122] : memref<2x16xf32, #tpu.memory_space<vmem>>, vector<2x16xf32>
    tpu.vector_store %arg7[%c0_121, %c0_122], %266 {strides = array<i32>} : memref<2x16xf32, #tpu.memory_space<vmem>>, vector<2x16xf32>,
    %c0_123 = arith.constant 0 : index
    %269 = arith.index_cast %235 : i32 to index
    %c0_124 = arith.constant 0 : index
    %270 = vector.load %arg5[%c0_123, %269, %c0_124] : memref<1x16x16xf32, #tpu.memory_space<vmem>>, vector<1x2x16xf32>
    %271 = vector.shape_cast %270 : vector<1x2x16xf32> to vector<2x16xf32>
    %272 = vector.shape_cast %266 : vector<2x16xf32> to vector<1x2x16xf32>
    tpu.vector_store %arg5[%c0_123, %269, %c0_124], %272 {strides = array<i32>} : memref<1x16x16xf32, #tpu.memory_space<vmem>>, vector<1x2x16xf32>,
    %c6_i32 = arith.constant 6 : i32
    %c2_i32_125 = arith.constant 2 : i32
    %273 = arith.muli %c2_i32_125, %c6_i32 : i32
    %c7_i32_126 = arith.constant 7 : i32
    %274 = arith.subi %c7_i32_126, %273 : i32
    %275 = arith.muli %arg0, %274 : i32
    %276 = arith.addi %c6_i32, %275 : i32
    %c2_i32_127 = arith.constant 2 : i32
    %277 = arith.muli %276, %c2_i32_127 : i32
    %278 = tpu.assume_multiple %277, 2 : i32
    %279 = arith.index_cast %278 : i32 to index
    %c0_128 = arith.constant 0 : index
    %280 = vector.load %arg6[%279, %c0_128] : memref<16x64xf32, #tpu.memory_space<vmem>>, vector<2x64xf32>
    %c0_129 = arith.constant 0 : index
    %c0_130 = arith.constant 0 : index
    %281 = vector.load %arg7[%c0_129, %c0_130] : memref<2x16xf32, #tpu.memory_space<vmem>>, vector<2x16xf32>
    %cst_131 = arith.constant dense<0.000000e+00> : vector<2x64xf32>
    %282 = tpu.matmul %281, %14, %cst_131 {dimension_numbers = #tpu.dot_dimension_numbers<[1], [0], [0], [1], [0, 0, 1, 1], [], []>} : vector<2x16xf32>, vector<16x64xf32>, vector<2x64xf32> -> vector<2x64xf32>
    %283 = arith.addf %280, %282 : vector<2x64xf32>
    %284 = vector.extract_strided_slice %283 {offsets = [0, 0], sizes = [2, 16], strides = [1, 1]} : vector<2x64xf32> to vector<2x16xf32>
    %285 = arith.negf %284 : vector<2x16xf32>
    %286 = math.exp %285 : vector<2x16xf32>
    %cst_132 = arith.constant 1.000000e+00 : f32
    %287 = vector.broadcast %cst_132 : f32 to vector<2x16xf32>
    %288 = arith.addf %287, %286 : vector<2x16xf32>
    %289 = arith.divf %287, %288 : vector<2x16xf32>
    %290 = vector.extract_strided_slice %283 {offsets = [0, 16], sizes = [2, 16], strides = [1, 1]} : vector<2x64xf32> to vector<2x16xf32>
    %291 = arith.negf %290 : vector<2x16xf32>
    %292 = math.exp %291 : vector<2x16xf32>
    %cst_133 = arith.constant 1.000000e+00 : f32
    %293 = vector.broadcast %cst_133 : f32 to vector<2x16xf32>
    %294 = arith.addf %293, %292 : vector<2x16xf32>
    %295 = arith.divf %293, %294 : vector<2x16xf32>
    %296 = vector.extract_strided_slice %283 {offsets = [0, 32], sizes = [2, 16], strides = [1, 1]} : vector<2x64xf32> to vector<2x16xf32>
    %297 = math.tanh %296 : vector<2x16xf32>
    %298 = vector.extract_strided_slice %283 {offsets = [0, 48], sizes = [2, 16], strides = [1, 1]} : vector<2x64xf32> to vector<2x16xf32>
    %299 = arith.negf %298 : vector<2x16xf32>
    %300 = math.exp %299 : vector<2x16xf32>
    %cst_134 = arith.constant 1.000000e+00 : f32
    %301 = vector.broadcast %cst_134 : f32 to vector<2x16xf32>
    %302 = arith.addf %301, %300 : vector<2x16xf32>
    %303 = arith.divf %301, %302 : vector<2x16xf32>
    %c0_135 = arith.constant 0 : index
    %c0_136 = arith.constant 0 : index
    %304 = vector.load %arg8[%c0_135, %c0_136] : memref<2x16xf32, #tpu.memory_space<vmem>>, vector<2x16xf32>
    %305 = arith.mulf %295, %304 : vector<2x16xf32>
    %306 = arith.mulf %289, %297 : vector<2x16xf32>
    %307 = arith.addf %305, %306 : vector<2x16xf32>
    %308 = math.tanh %307 : vector<2x16xf32>
    %309 = arith.mulf %303, %308 : vector<2x16xf32>
    %c0_137 = arith.constant 0 : index
    %c0_138 = arith.constant 0 : index
    %310 = vector.load %arg8[%c0_137, %c0_138] : memref<2x16xf32, #tpu.memory_space<vmem>>, vector<2x16xf32>
    tpu.vector_store %arg8[%c0_137, %c0_138], %307 {strides = array<i32>} : memref<2x16xf32, #tpu.memory_space<vmem>>, vector<2x16xf32>,
    %c0_139 = arith.constant 0 : index
    %c0_140 = arith.constant 0 : index
    %311 = vector.load %arg7[%c0_139, %c0_140] : memref<2x16xf32, #tpu.memory_space<vmem>>, vector<2x16xf32>
    tpu.vector_store %arg7[%c0_139, %c0_140], %309 {strides = array<i32>} : memref<2x16xf32, #tpu.memory_space<vmem>>, vector<2x16xf32>,
    %c0_141 = arith.constant 0 : index
    %312 = arith.index_cast %278 : i32 to index
    %c0_142 = arith.constant 0 : index
    %313 = vector.load %arg5[%c0_141, %312, %c0_142] : memref<1x16x16xf32, #tpu.memory_space<vmem>>, vector<1x2x16xf32>
    %314 = vector.shape_cast %313 : vector<1x2x16xf32> to vector<2x16xf32>
    %315 = vector.shape_cast %309 : vector<2x16xf32> to vector<1x2x16xf32>
    tpu.vector_store %arg5[%c0_141, %312, %c0_142], %315 {strides = array<i32>} : memref<1x16x16xf32, #tpu.memory_space<vmem>>, vector<1x2x16xf32>,
    %c7_i32_143 = arith.constant 7 : i32
    %c2_i32_144 = arith.constant 2 : i32
    %316 = arith.muli %c2_i32_144, %c7_i32_143 : i32
    %c7_i32_145 = arith.constant 7 : i32
    %317 = arith.subi %c7_i32_145, %316 : i32
    %318 = arith.muli %arg0, %317 : i32
    %319 = arith.addi %c7_i32_143, %318 : i32
    %c2_i32_146 = arith.constant 2 : i32
    %320 = arith.muli %319, %c2_i32_146 : i32
    %321 = tpu.assume_multiple %320, 2 : i32
    %322 = arith.index_cast %321 : i32 to index
    %c0_147 = arith.constant 0 : index
    %323 = vector.load %arg6[%322, %c0_147] : memref<16x64xf32, #tpu.memory_space<vmem>>, vector<2x64xf32>
    %c0_148 = arith.constant 0 : index
    %c0_149 = arith.constant 0 : index
    %324 = vector.load %arg7[%c0_148, %c0_149] : memref<2x16xf32, #tpu.memory_space<vmem>>, vector<2x16xf32>
    %cst_150 = arith.constant dense<0.000000e+00> : vector<2x64xf32>
    %325 = tpu.matmul %324, %14, %cst_150 {dimension_numbers = #tpu.dot_dimension_numbers<[1], [0], [0], [1], [0, 0, 1, 1], [], []>} : vector<2x16xf32>, vector<16x64xf32>, vector<2x64xf32> -> vector<2x64xf32>
    %326 = arith.addf %323, %325 : vector<2x64xf32>
    %327 = vector.extract_strided_slice %326 {offsets = [0, 0], sizes = [2, 16], strides = [1, 1]} : vector<2x64xf32> to vector<2x16xf32>
    %328 = arith.negf %327 : vector<2x16xf32>
    %329 = math.exp %328 : vector<2x16xf32>
    %cst_151 = arith.constant 1.000000e+00 : f32
    %330 = vector.broadcast %cst_151 : f32 to vector<2x16xf32>
    %331 = arith.addf %330, %329 : vector<2x16xf32>
    %332 = arith.divf %330, %331 : vector<2x16xf32>
    %333 = vector.extract_strided_slice %326 {offsets = [0, 16], sizes = [2, 16], strides = [1, 1]} : vector<2x64xf32> to vector<2x16xf32>
    %334 = arith.negf %333 : vector<2x16xf32>
    %335 = math.exp %334 : vector<2x16xf32>
    %cst_152 = arith.constant 1.000000e+00 : f32
    %336 = vector.broadcast %cst_152 : f32 to vector<2x16xf32>
    %337 = arith.addf %336, %335 : vector<2x16xf32>
    %338 = arith.divf %336, %337 : vector<2x16xf32>
    %339 = vector.extract_strided_slice %326 {offsets = [0, 32], sizes = [2, 16], strides = [1, 1]} : vector<2x64xf32> to vector<2x16xf32>
    %340 = math.tanh %339 : vector<2x16xf32>
    %341 = vector.extract_strided_slice %326 {offsets = [0, 48], sizes = [2, 16], strides = [1, 1]} : vector<2x64xf32> to vector<2x16xf32>
    %342 = arith.negf %341 : vector<2x16xf32>
    %343 = math.exp %342 : vector<2x16xf32>
    %cst_153 = arith.constant 1.000000e+00 : f32
    %344 = vector.broadcast %cst_153 : f32 to vector<2x16xf32>
    %345 = arith.addf %344, %343 : vector<2x16xf32>
    %346 = arith.divf %344, %345 : vector<2x16xf32>
    %c0_154 = arith.constant 0 : index
    %c0_155 = arith.constant 0 : index
    %347 = vector.load %arg8[%c0_154, %c0_155] : memref<2x16xf32, #tpu.memory_space<vmem>>, vector<2x16xf32>
    %348 = arith.mulf %338, %347 : vector<2x16xf32>
    %349 = arith.mulf %332, %340 : vector<2x16xf32>
    %350 = arith.addf %348, %349 : vector<2x16xf32>
    %351 = math.tanh %350 : vector<2x16xf32>
    %352 = arith.mulf %346, %351 : vector<2x16xf32>
    %c0_156 = arith.constant 0 : index
    %c0_157 = arith.constant 0 : index
    %353 = vector.load %arg8[%c0_156, %c0_157] : memref<2x16xf32, #tpu.memory_space<vmem>>, vector<2x16xf32>
    tpu.vector_store %arg8[%c0_156, %c0_157], %350 {strides = array<i32>} : memref<2x16xf32, #tpu.memory_space<vmem>>, vector<2x16xf32>,
    %c0_158 = arith.constant 0 : index
    %c0_159 = arith.constant 0 : index
    %354 = vector.load %arg7[%c0_158, %c0_159] : memref<2x16xf32, #tpu.memory_space<vmem>>, vector<2x16xf32>
    tpu.vector_store %arg7[%c0_158, %c0_159], %352 {strides = array<i32>} : memref<2x16xf32, #tpu.memory_space<vmem>>, vector<2x16xf32>,
    %c0_160 = arith.constant 0 : index
    %355 = arith.index_cast %321 : i32 to index
    %c0_161 = arith.constant 0 : index
    %356 = vector.load %arg5[%c0_160, %355, %c0_161] : memref<1x16x16xf32, #tpu.memory_space<vmem>>, vector<1x2x16xf32>
    %357 = vector.shape_cast %356 : vector<1x2x16xf32> to vector<2x16xf32>
    %358 = vector.shape_cast %352 : vector<2x16xf32> to vector<1x2x16xf32>
    tpu.vector_store %arg5[%c0_160, %355, %c0_161], %358 {strides = array<i32>} : memref<1x16x16xf32, #tpu.memory_space<vmem>>, vector<1x2x16xf32>,
    %c8_i32 = arith.constant 8 : i32
    return
  }
  func.func @transform_0(%arg0: i32) -> (i32, i32) {
    %c0_i32 = arith.constant 0 : i32
    %c0_i32_0 = arith.constant 0 : i32
    %c0_i32_1 = arith.constant 0 : i32
    return %c0_i32, %c0_i32_0 : i32, i32
  }
  func.func @transform_1(%arg0: i32) -> (i32, i32, i32) {
    %c0_i32 = arith.constant 0 : i32
    %c0_i32_0 = arith.constant 0 : i32
    %c0_i32_1 = arith.constant 0 : i32
    return %arg0, %c0_i32, %c0_i32_0 : i32, i32, i32
  }
  func.func @transform_2(%arg0: i32) -> (i32, i32, i32) {
    %c0_i32 = arith.constant 0 : i32
    %c0_i32_0 = arith.constant 0 : i32
    %c0_i32_1 = arith.constant 0 : i32
    return %arg0, %c0_i32, %c0_i32_0 : i32, i32, i32
  }
  func.func @transform_3(%arg0: i32) -> (i32, i32, i32) {
    %c0_i32 = arith.constant 0 : i32
    %c0_i32_0 = arith.constant 0 : i32
    %c0_i32_1 = arith.constant 0 : i32
    return %arg0, %c0_i32, %c0_i32_0 : i32, i32, i32
  }
  func.func @transform_4(%arg0: i32) -> (i32, i32, i32) {
    %c0_i32 = arith.constant 0 : i32
    %c0_i32_0 = arith.constant 0 : i32
    %c0_i32_1 = arith.constant 0 : i32
    return %arg0, %c0_i32, %c0_i32_0 : i32, i32, i32
  }
}

</mosaic_0001>

<bundles_post_ra>
// kernel: lstm_forward.2
= control target key start
LH: loop header
LB: loop body
LE: loop exit
PB: predicated region body
PF: predicated region fallthrough
CT: control target
= control target key end

     0   :  { %9 = vsyncpa [#allocation6], 0  ;;  %s2152_s0 = inlined_call_operand.vmem [shape: f32[16,16], index: 0, kind: input, shape index: {}]   ;;  %s2153_s1 = inlined_call_operand.hbm [shape: f32[2,16,64], index: 1, kind: input, shape index: {}]   ;;  %s2154_s2 = inlined_call_operand.vmem [shape: f32[2,16,64], index: 2, kind: input, shape index: {}]   ;;  %s2155_s3 = inlined_call_operand.vmem [shape: f32[2,1,64], index: 3, kind: input, shape index: {}]   ;;  %s2156_s4 = inlined_call_operand.vmem [shape: f32[2,16,16], index: 4, kind: output, shape index: {}]  }
   0x1   :  { %11 = vsyncpa [#allocation6 + $0x1], 0  ;;  %s1854_s15 = smov 0   ;;  %s1856_s16 = smov 0  }
   0x2   :  { %s1858_s17 = smov 0   ;;  %s1860_s18 = smov 0  }
   0x3 LB: > { %s1873_s19 = sadd.s32 4294967295, %s1816_s18   ;;  %s1876_s20 = sadd.s32 1, %s1816_s18   ;;  %s1816_s18 = sphi %s1860_s18, %s2163_s18   ;;  %s1812_s17 = sphi %s1858_s17, %s2162_s17   ;;  %s1808_s16 = sphi %s1856_s16, %s2161_s16   ;;  %s1804_s15 = sphi %s1854_s15, %s2160_s15  }
   0x4   : > { %s42_s21 = ssub.s32 %s1816_s18, %s1876_s20  ;;  %s45_s22 = sadd.s32 1, %s1812_s17 }
   0x5   : > { %p43_p0 = scmp.eq.s32.totalorder %s42_s21, 0  ;;  %p52_p1 = scmp.ne.s32.totalorder %s1812_s17, %s1808_s16 }
   0x6   : > { %p53_p2 = scmp.eq.s32.totalorder %s1816_s18, 0  ;;  %p58_p3 = scmp.ne.s32.totalorder %s1808_s16, %s1804_s15 }
   0x7   : > { %s1886_s23 = scalar_select %p43_p0, %s1812_s17, %s45_s22  }
   0x8   : > { %p54_p4 = por %p53_p2, %p52_p1  ;;  %p59_p5 = scmp.eq.s32.totalorder %s1873_s19, 0 }
   0x9   : > { %p1645_p6 = scmp.lt.s32.totalorder %s1816_s18, 2  ;;  %s163_s25 = sand.u32 1, %s1812_s17  }
   0xa   : > { %p1890_p7 = por %p59_p5, %p58_p3  ;;  %s1462_s26 = sshll.u32 %s163_s25, 4 }
   0xb   : > { %s1517_s27 = sshll.u32 %s1816_s18, 8  ;;  %s167_s5 = scalar_lea.vmem [#allocation5], %s1462_s26 }
   0xc   : > { %s1899_s30 = scalar_lea.hbm %s2153_s1, %s1517_s27  ;;  %s174_s6 = sshll.u32 %s167_s5, 4  ;;  %s1901_s6 = int_to_ptr.vmem [resolvable:$true] %s174_s6 }
   0xd   : > { %p1903_p8 = pnand %p1645_p6, %p54_p4  ;;  %s1908_s8 = scalar_lea.sflag [#allocation6], %s163_s25 }
   0xe   : > { %s1752_s9 = scalar_lea.hbm %s1899_s30, 256  ;;  %s1757_s12 = scalar_lea.hbm %s2153_s1, 512 }
   0xf   : > { %p1753_p10 = scmp.ne.s32.totalorder %s1899_s30, %s1752_s9  ;;  %p1754_p11 = pneg %p1903_p8 }
  0x10   : > { %p1758_p0 = scmp.lt.u32.totalorder %s1899_s30, %s2153_s1  ;;  %p1759_p1 = scmp.lt.u32.totalorder %s1757_s12, %s1752_s9 }
  0x11   : > { %p1755_p12 = pnand %p1754_p11, %p1753_p10  ;;  %p1761_p3 = scmp.lt.u32.totalorder %s1752_s9, %s1899_s30 }
  0x12   : > { %p1760_p2 = por %p1759_p1, %p1758_p0 }
  0x13   : > { %p1756_p13 = pneg %p1755_p12 }
  0x14   : > { %p1762_p4 = por %p1761_p3, %p1760_p2 }
  0x16   : > { %p1763_p5 = pnand %p1762_p4, %p1756_p13 }
  0x18   : > { %1766 = shalt.err (!%p1763_p5)
}
  0x19   : > { %s1767_s15 = scalar_lea.vmem %s1901_s6, 256  ;;  %s1818_s21 = smov [#allocation5]  }
  0x1a   : > { %p1768_p6 = scmp.ne.s32.totalorder %s1901_s6, %s1767_s15  ;;  %s1772_s22 = sshll.u32 %s1818_s21, 4  ;;  %s1773_s22 = int_to_ptr.vmem [resolvable:$false] %s1772_s22 }
  0x1b   : > { %s1774_s25 = scalar_lea.vmem %s1773_s22, 512  ;;  %p1775_p9 = scmp.lt.s32.totalorder %s1901_s6, %s1773_s22 }
  0x1c   : > { %p1770_p10 = pnand %p1768_p6, %p1754_p11  ;;  %p1776_p0 = scmp.lt.s32.totalorder %s1774_s25, %s1767_s15 }
  0x1e   : > { %p1771_p12 = pneg %p1770_p10  ;;  %p1777_p1 = por %p1776_p0, %p1775_p9 }
  0x20   : > { %p1778_p2 = pnand %p1777_p1, %p1771_p12 }
  0x22   : > { %1781 = shalt.err (!%p1778_p2)
}
  0x23   : > { %s1819_s26 = smov 128   ;;  %s1820_s27 = smov 8  }
  0x24   : > { %1644 = dma.hbm_to_vmem [thread:$0]  (!%p1903_p8), %s1899_s30, 256, %s1901_s6, %s1908_s8, %s1819_s26, %s1819_s26, %s1820_s27  }
  0x25   : > { %p196_p11 = scmp.lt.s32.totalorder %s1816_s18, 3  ;;  %p2159_p13 = scmp.ge.s32.totalorder %s1816_s18, 1 }
  0x27   : > { %p197_p3 = pnand %p2159_p13, %p196_p11 }
  0x28   : > { %s202_s28 = sand.u32 (!%p197_p3), 1, %s1808_s16  }
  0x29   : > { %200 = sbr.rel (%p197_p3) target bundleno = 5742 (0x166e), region = 36  ;;  %s1466_s29 = sshll.u32 (!%p197_p3), %s202_s28, 4 }
  0x2a   : > { %s203_s5 = scalar_lea.sflag (!%p197_p3), [#allocation6], %s202_s28  ;;  %s206_s9 = scalar_lea.vmem (!%p197_p3), [#allocation5], %s1466_s29 }
  0x30   : > { %1799 = dma.done.wait (%p1890_p7), %s203_s5, 256  }
  0x31   : > { %1801 = vsyncadd (%p1890_p7), %s203_s5, 4294967040  ;;  %p239_p9 = scmp.lt.s32.totalorder %s1873_s19, 1  ;;  %vm348_vm0 = vcmask 123904   ;;  %v1821_v0 = vmov 0.0|0.0   ;;  %v1822_v1 = vmov 0.0   ;;  %vm1823_vm1 = vmmov 0  }
  0x32   : > { %1615 = vmatprep.subr.bf16.mxu1 %v1821_v0  ;;  %349 = vst.msk [vmem:[#allocation3] sm:$0x3] %vm348_vm0, %v1822_v1  ;;  %350 = vst.msk [vmem:[#allocation4] sm:$0x3] %vm348_vm0, %v1822_v1  ;;  %1559 = vmatprep.mubr.msk.f32.mxu1 %vm1823_vm1, %v1822_v1  ;;  %vm263_vm2 = vcmask 130048   ;;  %v254_v2 = vld [vmem:[%s206_s9] sm:$0xff] }
  0x33   : > { %s1951_s18 = scalar_select %p239_p9, %s1873_s19, 1  ;;  %v255_v3 = vld [vmem:[%s206_s9 + $0x8] sm:$0xff]  ;;  %vm345_vm3 = vcmask 523264  }
  0x34   : > { %v252_v4 = vld [vmem:[%s2152_s0] sm:$0xff]  ;;  %v1611_v5 = vpack.c.bf16 %v255_v3, %v254_v2  ;;  %v253_v9 = vld [vmem:[%s2152_s0 + $0x8] sm:$0xff]  ;;  %s353_s21 = smul.u32 14, %s1873_s19  ;;  %s1824_s25 = smov 96  }
  0x35   : > { %s1518_s24 = sshll.u32 %s1951_s18, 4  ;;  %1552 = vmatprep.mubr.msk.f32.mxu0 %vm263_vm2, %v252_v4  ;;  %s246_s15 = scalar_lea.vmem %s2155_s3, %s1951_s18 }
  0x36   : > { %s243_s7 = scalar_lea.vmem %s2154_s2, %s1518_s24  ;;  %1612 = vmatprep.subr.bf16.mxu0 %v1611_v5  ;;  %v1471_v11 = vld [vmem:[%s246_s15] ss:$0 sm:$0xff]  ;;  %s354_s22 = scalar_lea.vmem [#allocation2], %s353_s21 }
  0x37   : > { %v351_v6 = vld [vmem:[%s243_s7] sm:$0xff]  ;;  %v352_v7 = vld [vmem:[%s243_s7 + $0x8] sm:$0xff]  ;;  %1614 = vmatpush3.bf16.msra.mxu0 %v1611_v5  ;;  %s1825_s26 = smov 16   ;;  %s1826_s27 = smov 32  }
  0x38   : > { %v1965_v8 = vpack.c.bf16 %v352_v7, %v351_v6  ;;  %1618 = vmatprep.subr.bf16.mxu0 %v1821_v0  ;;  %s1827_s28 = smov 112   ;;  %s1828_s29 = smov 80  }
  0x39   : > { %v356_v10 = vld [vmem:[#allocation3] sm:$0x3]  ;;  %v438_v21 = vld [vmem:[#allocation4] sm:$0x3]  ;;  %s2003_s30 = scalar_lea.vmem %s2156_s4, %s1518_s24  ;;  %s1476_s18 = smul.u32 10, %s1873_s19 }
  0x3a   : > { %1617 = vmatpush3.bf16.msra.mxu1 %v1965_v8  ;;  %1553 = vmatmul.mubr.msk.f32.vlgmr.msra.gmra.mrb[0].mxu0 %vm263_vm2, %v253_v9  ;;  %s470_s6 = scalar_lea.vmem %s2003_s30, %s353_s21  ;;  %s1482_s8 = smul.u32 6, %s1873_s19 }
  0x3b   : > { %1621 = vmatprep.subr.bf16.mxu1 %v1821_v0  ;;  %1620 = vmatpush3.bf16.msra.mxu0 %v1965_v8  ;;  %s1371_s24 = scalar_lea.vmem [#allocation2], %s1476_s18  ;;  %s1375_s7 = scalar_lea.vmem %s2003_s30, %s1476_s18 }
  0x3c   : > { %1566 = vmatprep.mubr.msk.f32.mxu0 %vm1823_vm1, %v1822_v1  ;;  %1624 = vmatprep.subr.bf16.mxu0 %v1821_v0  ;;  %s1379_s10 = scalar_lea.vmem [#allocation2], %s1482_s8  ;;  %s1383_s11 = scalar_lea.vmem %s2003_s30, %s1482_s8 }
  0x3d   : > { %1560 = vmatmul.mubr.msk.f32.vlgmr.msra.gmra.mrb[0].mxu1 %vm263_vm2, %v356_v10  ;;  %s1488_s12 = sshll.u32 %s1873_s19, 1  ;;  %s834_s15 = ssub.s32 4, %s1873_s19 }
  0x3e   : > { %1623 = vmatpush3.bf16.msra.mxu1 %v1965_v8  ;;  %1573 = vmatprep.mubr.msk.f32.mxu1 %vm1823_vm1, %v1822_v1  ;;  %s1386_s13 = scalar_lea.vmem [#allocation2], %s1488_s12  ;;  %s1389_s14 = scalar_lea.vmem %s2003_s30, %s1488_s12 }
  0x3f   : > { %1627 = vmatprep.subr.bf16.mxu1 %v1821_v0  ;;  %s2075_s21 = sshll.u32 %s834_s15, 1  ;;  %s1497_s9 = smul.u32 4294967290, %s1873_s19 }
  0x40   : > { %s952_s5 = scalar_lea.vmem %s2003_s30, %s2075_s21 }
  0x41   : > { %s1401_s18 = scalar_lea.vmem %s2003_s30, %s1497_s9 }
 0x10d   : > { %v1554_v12 = vpop.f32.mrb[0].mxu0 }
 0x10e   : > { %v342_v14 = vadd.f32 %v1554_v12, %v1471_v11  ;;  %v336_v15 = vpop.f32.mrb[1].mxu0 }
 0x10f   : > { %v337_v17 = vadd.f32 %v1471_v11, %v336_v15 }
 0x110   : > { %v426_v13 = vpop.f32.mrb[0].mxu1  ;;  %347 = vst.msk [vmem:[#allocation2 + $0x8] sm:$0xff] %vm345_vm3, %v342_v14 }
 0x111   : > { %v1561_v16 = vpop.f32.mrb[1].mxu1  ;;  %346 = vst.msk [vmem:[#allocation2] sm:$0xff] %vm345_vm3, %v337_v17 }
 0x118   : > { %v355_v18 = vld [vmem:[%s354_s22] sm:$0x3]  ;;  %v1477_v39 = vld [vmem:[%s1371_s24 + $0x2] sm:$0x3]  ;;  %v1483_v61 = vld [vmem:[%s1379_s10 + $0x4] sm:$0x3] }
 0x119   : > { %v430_v19 = vadd.f32 %v426_v13, %v355_v18  ;;  %s836_s22 = scalar_lea.vmem [#allocation2], %s2075_s21  ;;  %s1503_s24 = smul.u32 4294967286, %s1873_s19 }
 0x11a   : > { %s1509_s10 = smul.u32 4294967282, %s1873_s19 }
 0x11b   : > { %1688 = vtanh.f32 %v430_v19  ;;  %v1475_v22 = vmul.f32 -1.442695, %v430_v19  ;;  %s1409_s8 = scalar_lea.vmem %s2003_s30, %s1503_s24 }
 0x11d   : > { %1690 = vpow2.f32 %v1475_v22  ;;  %v1489_v22 = vld [vmem:[%s1386_s13 + $0x6] sm:$0x3] }
 0x125   : > { %v1689_v20 = vpop.eup %1688 }
 0x126   : > { %445 = vrot.lane.b32.xlu0 %v1689_v20, %s1824_s25 }
 0x127   : > { %v1691_v23 = vpop.eup %1690 }
 0x128   : > { %v434_v24 = vadd.f32 1.0, %v1691_v23 }
 0x12a   : > { %440 = vrot.lane.b32.xlu0 %v438_v21, %s1825_s26  ;;  %1692 = vrcp.f32 %v434_v24 }
 0x134   : > { %v1693_v25 = vpop.eup %1692 }
 0x198   : > { %v446_v26 = vpop.permute.xlu0 %445 }
 0x199   : > { %v448_v27 = vmul.f32 %v1693_v25, %v446_v26 }
 0x19b   : > { %450 = vrot.lane.b32.xlu1 %v448_v27, %s1825_s26 }
 0x19c   : > { %v441_v28 = vpop.permute.xlu0 %440 }
 0x19d   : > { %v443_v29 = vmul.f32 %v1693_v25, %v441_v28 }
 0x20d   : > { %v451_v30 = vpop.permute.xlu1 %450 }
 0x20e   : > { %v453_v31 = vadd.f32 %v451_v30, %v443_v29 }
 0x210   : > { %1694 = vtanh.f32 %v453_v31 }
 0x21a   : > { %v1695_v32 = vpop.eup %1694 }
 0x21b   : > { %456 = vrot.lane.b32.xlu1 %v1695_v32, %s1826_s27 }
 0x21f   : > { %461 = vrot.lane.b32.xlu1 %v453_v31, %s1827_s28 }
 0x28d   : > { %v457_v33 = vpop.permute.xlu1 %456 }
 0x28e   : > { %v459_v34 = vmul.f32 %v1693_v25, %v457_v33 }
 0x290   : > { %466 = vrot.lane.b32.xlu0 %v459_v34, %s1828_s29 }
 0x291   : > { %v462_v35 = vpop.permute.xlu1 %461 }
 0x292   : > { %464 = vst.msk [vmem:[#allocation4] sm:$0x3] %vm348_vm0, %v462_v35 }
 0x299   : > { %v559_v36 = vld [vmem:[#allocation4] sm:$0x3] }
 0x29a   : > { %561 = vrot.lane.b32.xlu1 %v559_v36, %s1825_s26 }
 0x302   : > { %v467_v37 = vpop.permute.xlu0 %466 }
 0x303   : > { %469 = vst.msk [vmem:[#allocation3] sm:$0x3] %vm348_vm0, %v467_v37  ;;  %471 = vst.msk [vmem:[%s470_s6] sm:$0x3] %vm348_vm0, %v467_v37  ;;  %s1397_s6 = scalar_lea.vmem [#allocation2], %s1497_s9 }
 0x30a   : > { %v477_v38 = vld [vmem:[#allocation3] sm:$0x3] }
 0x30b   : > { %1567 = vmatmul.mubr.msk.f32.vlgmr.msra.gmra.mrb[2].mxu0 %vm263_vm2, %v477_v38 }
 0x30c   : > { %1626 = vmatpush3.bf16.msra.mxu0 %v1965_v8  ;;  %1580 = vmatprep.mubr.msk.f32.mxu0 %vm1823_vm1, %v1822_v1  ;;  %v562_v50 = vpop.permute.xlu1 %561 }
 0x30d   : > { %1630 = vmatprep.subr.bf16.mxu0 %v1821_v0 }
 0x3de   : > { %v547_v40 = vpop.f32.mrb[2].mxu0 }
 0x3df   : > { %v551_v41 = vadd.f32 %v1477_v39, %v547_v40  ;;  %v1568_v42 = vpop.f32.mrb[3].mxu0 }
 0x3e1   : > { %1696 = vtanh.f32 %v551_v41  ;;  %v1479_v44 = vmul.f32 -1.442695, %v551_v41 }
 0x3e3   : > { %1698 = vpow2.f32 %v1479_v44 }
 0x3eb   : > { %v1697_v43 = vpop.eup %1696 }
 0x3ec   : > { %566 = vrot.lane.b32.xlu0 %v1697_v43, %s1824_s25  ;;  %v837_v43 = vld [vmem:[%s836_s22] sm:$0x3] }
 0x3ed   : > { %v1699_v45 = vpop.eup %1698 }
 0x3ee   : > { %v555_v46 = vadd.f32 1.0, %v1699_v45 }
 0x3f0   : > { %1700 = vrcp.f32 %v555_v46 }
 0x3fa   : > { %v1701_v47 = vpop.eup %1700 }
 0x3fb   : > { %v564_v51 = vmul.f32 %v1701_v47, %v562_v50 }
 0x45e   : > { %v567_v48 = vpop.permute.xlu0 %566 }
 0x45f   : > { %v569_v49 = vmul.f32 %v1701_v47, %v567_v48 }
 0x461   : > { %571 = vrot.lane.b32.xlu0 %v569_v49, %s1825_s26 }
 0x4d3   : > { %v572_v52 = vpop.permute.xlu0 %571 }
 0x4d4   : > { %v574_v53 = vadd.f32 %v572_v52, %v564_v51 }
 0x4d6   : > { %1702 = vtanh.f32 %v574_v53 }
 0x4e0   : > { %v1703_v54 = vpop.eup %1702 }
 0x4e1   : > { %577 = vrot.lane.b32.xlu1 %v1703_v54, %s1826_s27 }
 0x4e5   : > { %582 = vrot.lane.b32.xlu1 %v574_v53, %s1827_s28 }
 0x553   : > { %v578_v55 = vpop.permute.xlu1 %577 }
 0x554   : > { %v580_v56 = vmul.f32 %v1701_v47, %v578_v55 }
 0x556   : > { %587 = vrot.lane.b32.xlu0 %v580_v56, %s1828_s29 }
 0x557   : > { %v583_v57 = vpop.permute.xlu1 %582 }
 0x558   : > { %585 = vst.msk [vmem:[#allocation4] sm:$0x3] %vm348_vm0, %v583_v57 }
 0x55f   : > { %v680_v58 = vld [vmem:[#allocation4] sm:$0x3] }
 0x560   : > { %682 = vrot.lane.b32.xlu1 %v680_v58, %s1825_s26 }
 0x5c8   : > { %v588_v59 = vpop.permute.xlu0 %587 }
 0x5c9   : > { %590 = vst.msk [vmem:[#allocation3] sm:$0x3] %vm348_vm0, %v588_v59  ;;  %1481 = vst.msk [vmem:[%s1375_s7 + $0x2] sm:$0x3] %vm348_vm0, %v588_v59  ;;  %s1405_s7 = scalar_lea.vmem [#allocation2], %s1503_s24 }
 0x5d0   : > { %v598_v60 = vld [vmem:[#allocation3] sm:$0x3] }
 0x5d1   : > { %1574 = vmatmul.mubr.msk.f32.vlgmr.msra.gmra.mrb[2].mxu1 %vm263_vm2, %v598_v60 }
 0x5d2   : > { %1629 = vmatpush3.bf16.msra.mxu1 %v1965_v8  ;;  %1587 = vmatprep.mubr.msk.f32.mxu1 %vm1823_vm1, %v1822_v1  ;;  %v683_v11 = vpop.permute.xlu1 %682 }
 0x5d3   : > { %1633 = vmatprep.subr.bf16.mxu1 %v1821_v0 }
 0x6a4   : > { %v668_v62 = vpop.f32.mrb[2].mxu1 }
 0x6a5   : > { %v672_v63 = vadd.f32 %v1483_v61, %v668_v62  ;;  %v1575_v2 = vpop.f32.mrb[3].mxu1 }
 0x6a7   : > { %1704 = vtanh.f32 %v672_v63  ;;  %v1485_v4 = vmul.f32 -1.442695, %v672_v63 }
 0x6a9   : > { %1706 = vpow2.f32 %v1485_v4 }
 0x6b1   : > { %v1705_v3 = vpop.eup %1704 }
 0x6b2   : > { %687 = vrot.lane.b32.xlu0 %v1705_v3, %s1824_s25  ;;  %v1498_v3 = vld [vmem:[%s1397_s6 + $0xa] sm:$0x3] }
 0x6b3   : > { %v1707_v5 = vpop.eup %1706 }
 0x6b4   : > { %v676_v6 = vadd.f32 1.0, %v1707_v5 }
 0x6b6   : > { %1708 = vrcp.f32 %v676_v6 }
 0x6c0   : > { %v1709_v7 = vpop.eup %1708 }
 0x6c1   : > { %v685_v12 = vmul.f32 %v1709_v7, %v683_v11 }
 0x724   : > { %v688_v9 = vpop.permute.xlu0 %687 }
 0x725   : > { %v690_v10 = vmul.f32 %v1709_v7, %v688_v9 }
 0x727   : > { %692 = vrot.lane.b32.xlu0 %v690_v10, %s1825_s26 }
 0x799   : > { %v693_v13 = vpop.permute.xlu0 %692 }
 0x79a   : > { %v695_v14 = vadd.f32 %v693_v13, %v685_v12 }
 0x79c   : > { %1710 = vtanh.f32 %v695_v14 }
 0x7a6   : > { %v1711_v15 = vpop.eup %1710 }
 0x7a7   : > { %698 = vrot.lane.b32.xlu1 %v1711_v15, %s1826_s27 }
 0x7ab   : > { %703 = vrot.lane.b32.xlu1 %v695_v14, %s1827_s28 }
 0x819   : > { %v699_v16 = vpop.permute.xlu1 %698 }
 0x81a   : > { %v701_v17 = vmul.f32 %v1709_v7, %v699_v16 }
 0x81c   : > { %708 = vrot.lane.b32.xlu0 %v701_v17, %s1828_s29 }
 0x81d   : > { %v704_v18 = vpop.permute.xlu1 %703 }
 0x81e   : > { %706 = vst.msk [vmem:[#allocation4] sm:$0x3] %vm348_vm0, %v704_v18 }
 0x825   : > { %v800_v19 = vld [vmem:[#allocation4] sm:$0x3] }
 0x826   : > { %802 = vrot.lane.b32.xlu1 %v800_v19, %s1825_s26 }
 0x88e   : > { %v709_v20 = vpop.permute.xlu0 %708 }
 0x88f   : > { %711 = vst.msk [vmem:[#allocation3] sm:$0x3] %vm348_vm0, %v709_v20  ;;  %1487 = vst.msk [vmem:[%s1383_s11 + $0x4] sm:$0x3] %vm348_vm0, %v709_v20  ;;  %s1413_s11 = scalar_lea.vmem [#allocation2], %s1509_s10 }
 0x896   : > { %v718_v21 = vld [vmem:[#allocation3] sm:$0x3] }
 0x897   : > { %1581 = vmatmul.mubr.msk.f32.vlgmr.msra.gmra.mrb[4].mxu0 %vm263_vm2, %v718_v21 }
 0x898   : > { %1632 = vmatpush3.bf16.msra.mxu0 %v1965_v8  ;;  %1594 = vmatprep.mubr.msk.f32.mxu0 %vm1823_vm1, %v1822_v1 }
 0x899   : > { %1636 = vmatprep.subr.bf16.mxu0 %v1821_v0  ;;  %v803_v0 = vpop.permute.xlu1 %802 }
 0x96a   : > { %v788_v23 = vpop.f32.mrb[4].mxu0 }
 0x96b   : > { %v792_v24 = vadd.f32 %v1489_v22, %v788_v23  ;;  %v1582_v25 = vpop.f32.mrb[5].mxu0 }
 0x96d   : > { %1712 = vtanh.f32 %v792_v24  ;;  %v1491_v27 = vmul.f32 -1.442695, %v792_v24  ;;  %v1504_v24 = vld [vmem:[%s1405_s7 + $0xc] sm:$0x3] }
 0x96f   : > { %1714 = vpow2.f32 %v1491_v27 }
 0x977   : > { %v1713_v26 = vpop.eup %1712 }
 0x978   : > { %807 = vrot.lane.b32.xlu0 %v1713_v26, %s1824_s25 }
 0x979   : > { %v1715_v28 = vpop.eup %1714 }
 0x97a   : > { %v796_v29 = vadd.f32 1.0, %v1715_v28 }
 0x97c   : > { %1716 = vrcp.f32 %v796_v29 }
 0x986   : > { %v1717_v30 = vpop.eup %1716 }
 0x987   : > { %v805_v33 = vmul.f32 %v1717_v30, %v803_v0 }
 0x9ea   : > { %v808_v31 = vpop.permute.xlu0 %807 }
 0x9eb   : > { %v810_v32 = vmul.f32 %v1717_v30, %v808_v31 }
 0x9ed   : > { %812 = vrot.lane.b32.xlu0 %v810_v32, %s1825_s26 }
 0xa5f   : > { %v813_v34 = vpop.permute.xlu0 %812 }
 0xa60   : > { %v815_v35 = vadd.f32 %v813_v34, %v805_v33 }
 0xa62   : > { %1718 = vtanh.f32 %v815_v35 }
 0xa6c   : > { %v1719_v36 = vpop.eup %1718 }
 0xa6d   : > { %818 = vrot.lane.b32.xlu1 %v1719_v36, %s1826_s27 }
 0xa71   : > { %823 = vrot.lane.b32.xlu1 %v815_v35, %s1827_s28 }
 0xadf   : > { %v819_v37 = vpop.permute.xlu1 %818 }
 0xae0   : > { %v821_v38 = vmul.f32 %v1717_v30, %v819_v37 }
 0xae2   : > { %828 = vrot.lane.b32.xlu0 %v821_v38, %s1828_s29 }
 0xae3   : > { %v824_v39 = vpop.permute.xlu1 %823 }
 0xae4   : > { %826 = vst.msk [vmem:[#allocation4] sm:$0x3] %vm348_vm0, %v824_v39 }
 0xaeb   : > { %v920_v40 = vld [vmem:[#allocation4] sm:$0x3] }
 0xaec   : > { %922 = vrot.lane.b32.xlu1 %v920_v40, %s1825_s26 }
 0xb54   : > { %v829_v41 = vpop.permute.xlu0 %828 }
 0xb55   : > { %831 = vst.msk [vmem:[#allocation3] sm:$0x3] %vm348_vm0, %v829_v41  ;;  %1493 = vst.msk [vmem:[%s1389_s14 + $0x6] sm:$0x3] %vm348_vm0, %v829_v41 }
 0xb5c   : > { %v838_v42 = vld [vmem:[#allocation3] sm:$0x3] }
 0xb5d   : > { %1588 = vmatmul.mubr.msk.f32.vlgmr.msra.gmra.mrb[4].mxu1 %vm263_vm2, %v838_v42 }
 0xb5e   : > { %1635 = vmatpush3.bf16.msra.mxu1 %v1965_v8  ;;  %1601 = vmatprep.mubr.msk.f32.mxu1 %vm1823_vm1, %v1822_v1  ;;  %v923_v54 = vpop.permute.xlu1 %922 }
 0xc30   : > { %v908_v44 = vpop.f32.mrb[4].mxu1 }
 0xc31   : > { %v912_v45 = vadd.f32 %v908_v44, %v837_v43  ;;  %v1589_v46 = vpop.f32.mrb[5].mxu1 }
 0xc33   : > { %1720 = vtanh.f32 %v912_v45  ;;  %v1496_v48 = vmul.f32 -1.442695, %v912_v45  ;;  %v1510_v45 = vld [vmem:[%s1413_s11 + $0xe] sm:$0x3] }
 0xc35   : > { %1722 = vpow2.f32 %v1496_v48 }
 0xc3d   : > { %v1721_v47 = vpop.eup %1720 }
 0xc3e   : > { %927 = vrot.lane.b32.xlu0 %v1721_v47, %s1824_s25 }
 0xc3f   : > { %v1723_v49 = vpop.eup %1722 }
 0xc40   : > { %v916_v50 = vadd.f32 1.0, %v1723_v49 }
 0xc42   : > { %1724 = vrcp.f32 %v916_v50 }
 0xc4c   : > { %v1725_v51 = vpop.eup %1724 }
 0xc4d   : > { %v925_v55 = vmul.f32 %v1725_v51, %v923_v54 }
 0xcb0   : > { %v928_v52 = vpop.permute.xlu0 %927 }
 0xcb1   : > { %v930_v53 = vmul.f32 %v1725_v51, %v928_v52 }
 0xcb3   : > { %932 = vrot.lane.b32.xlu0 %v930_v53, %s1825_s26 }
 0xd25   : > { %v933_v56 = vpop.permute.xlu0 %932 }
 0xd26   : > { %v935_v57 = vadd.f32 %v933_v56, %v925_v55 }
 0xd28   : > { %1726 = vtanh.f32 %v935_v57 }
 0xd32   : > { %v1727_v58 = vpop.eup %1726 }
 0xd33   : > { %938 = vrot.lane.b32.xlu1 %v1727_v58, %s1826_s27 }
 0xd37   : > { %943 = vrot.lane.b32.xlu1 %v935_v57, %s1827_s28 }
 0xda5   : > { %v939_v59 = vpop.permute.xlu1 %938 }
 0xda6   : > { %v941_v60 = vmul.f32 %v1725_v51, %v939_v59 }
 0xda8   : > { %948 = vrot.lane.b32.xlu0 %v941_v60, %s1828_s29 }
 0xda9   : > { %v944_v61 = vpop.permute.xlu1 %943 }
 0xdaa   : > { %946 = vst.msk [vmem:[#allocation4] sm:$0x3] %vm348_vm0, %v944_v61 }
 0xdb1   : > { %v1041_v62 = vld [vmem:[#allocation4] sm:$0x3] }
 0xdb2   : > { %1043 = vrot.lane.b32.xlu1 %v1041_v62, %s1825_s26 }
 0xe1a   : > { %v949_v63 = vpop.permute.xlu0 %948 }
 0xe1b   : > { %951 = vst.msk [vmem:[#allocation3] sm:$0x3] %vm348_vm0, %v949_v63  ;;  %953 = vst.msk [vmem:[%s952_s5] sm:$0x3] %vm348_vm0, %v949_v63 }
 0xe22   : > { %v959_v2 = vld [vmem:[#allocation3] sm:$0x3] }
 0xe23   : > { %1595 = vmatmul.mubr.msk.f32.vlgmr.msra.gmra.mrb[6].mxu0 %vm263_vm2, %v959_v2 }
 0xe24   : > { %1638 = vmatpush3.bf16.msra.mxu0 %v1965_v8  ;;  %1608 = vmatprep.mubr.msk.f32.mxu0 %vm1823_vm1, %v1822_v1  ;;  %v1044_v1 = vpop.permute.xlu1 %1043 }
 0xef6   : > { %v1029_v4 = vpop.f32.mrb[6].mxu0 }
 0xef7   : > { %v1033_v5 = vadd.f32 %v1498_v3, %v1029_v4  ;;  %v1596_v6 = vpop.f32.mrb[7].mxu0 }
 0xef9   : > { %1728 = vtanh.f32 %v1033_v5  ;;  %v1500_v9 = vmul.f32 -1.442695, %v1033_v5 }
 0xefb   : > { %1730 = vpow2.f32 %v1500_v9 }
 0xf03   : > { %v1729_v7 = vpop.eup %1728 }
 0xf04   : > { %1048 = vrot.lane.b32.xlu0 %v1729_v7, %s1824_s25 }
 0xf05   : > { %v1731_v10 = vpop.eup %1730 }
 0xf06   : > { %v1037_v11 = vadd.f32 1.0, %v1731_v10 }
 0xf08   : > { %1732 = vrcp.f32 %v1037_v11 }
 0xf12   : > { %v1733_v8 = vpop.eup %1732 }
 0xf13   : > { %v1046_v14 = vmul.f32 %v1733_v8, %v1044_v1 }
 0xf76   : > { %v1049_v12 = vpop.permute.xlu0 %1048 }
 0xf77   : > { %v1051_v13 = vmul.f32 %v1733_v8, %v1049_v12 }
 0xf79   : > { %1053 = vrot.lane.b32.xlu0 %v1051_v13, %s1825_s26 }
 0xfeb   : > { %v1054_v15 = vpop.permute.xlu0 %1053 }
 0xfec   : > { %v1056_v16 = vadd.f32 %v1054_v15, %v1046_v14 }
 0xfee   : > { %1734 = vtanh.f32 %v1056_v16 }
 0xff8   : > { %v1735_v17 = vpop.eup %1734 }
 0xff9   : > { %1059 = vrot.lane.b32.xlu1 %v1735_v17, %s1826_s27 }
 0xffd   : > { %1064 = vrot.lane.b32.xlu1 %v1056_v16, %s1827_s28 }
0x106b   : > { %v1060_v18 = vpop.permute.xlu1 %1059 }
0x106c   : > { %v1062_v19 = vmul.f32 %v1733_v8, %v1060_v18 }
0x106e   : > { %1069 = vrot.lane.b32.xlu0 %v1062_v19, %s1828_s29 }
0x106f   : > { %v1065_v20 = vpop.permute.xlu1 %1064 }
0x1070   : > { %1067 = vst.msk [vmem:[#allocation4] sm:$0x3] %vm348_vm0, %v1065_v20 }
0x1077   : > { %v1162_v21 = vld [vmem:[#allocation4] sm:$0x3] }
0x1078   : > { %1164 = vrot.lane.b32.xlu1 %v1162_v21, %s1825_s26 }
0x10e0   : > { %v1070_v22 = vpop.permute.xlu0 %1069 }
0x10e1   : > { %1072 = vst.msk [vmem:[#allocation3] sm:$0x3] %vm348_vm0, %v1070_v22  ;;  %1502 = vst.msk [vmem:[%s1401_s18 + $0xa] sm:$0x3] %vm348_vm0, %v1070_v22 }
0x10e8   : > { %v1080_v23 = vld [vmem:[#allocation3] sm:$0x3] }
0x10e9   : > { %1602 = vmatmul.mubr.msk.f32.vlgmr.msra.gmra.mrb[6].mxu1 %vm263_vm2, %v1080_v23 }
0x10ea   : > { %v1165_v34 = vpop.permute.xlu1 %1164 }
0x11bc   : > { %v1150_v25 = vpop.f32.mrb[6].mxu1 }
0x11bd   : > { %v1154_v26 = vadd.f32 %v1504_v24, %v1150_v25  ;;  %v1603_v27 = vpop.f32.mrb[7].mxu1 }
0x11bf   : > { %1736 = vtanh.f32 %v1154_v26  ;;  %v1506_v29 = vmul.f32 -1.442695, %v1154_v26 }
0x11c1   : > { %1738 = vpow2.f32 %v1506_v29 }
0x11c9   : > { %v1737_v28 = vpop.eup %1736 }
0x11ca   : > { %1169 = vrot.lane.b32.xlu0 %v1737_v28, %s1824_s25 }
0x11cb   : > { %v1739_v30 = vpop.eup %1738 }
0x11cc   : > { %v1158_v31 = vadd.f32 1.0, %v1739_v30 }
0x11ce   : > { %1740 = vrcp.f32 %v1158_v31 }
0x11d8   : > { %v1741_v32 = vpop.eup %1740 }
0x11d9   : > { %v1167_v35 = vmul.f32 %v1741_v32, %v1165_v34 }
0x123c   : > { %v1170_v0 = vpop.permute.xlu0 %1169 }
0x123d   : > { %v1172_v33 = vmul.f32 %v1741_v32, %v1170_v0 }
0x123f   : > { %1174 = vrot.lane.b32.xlu0 %v1172_v33, %s1825_s26 }
0x12b1   : > { %v1175_v36 = vpop.permute.xlu0 %1174 }
0x12b2   : > { %v1177_v37 = vadd.f32 %v1175_v36, %v1167_v35 }
0x12b4   : > { %1742 = vtanh.f32 %v1177_v37 }
0x12be   : > { %v1743_v38 = vpop.eup %1742 }
0x12bf   : > { %1180 = vrot.lane.b32.xlu1 %v1743_v38, %s1826_s27 }
0x12c3   : > { %1185 = vrot.lane.b32.xlu1 %v1177_v37, %s1827_s28 }
0x1331   : > { %v1181_v39 = vpop.permute.xlu1 %1180 }
0x1332   : > { %v1183_v40 = vmul.f32 %v1741_v32, %v1181_v39 }
0x1334   : > { %1190 = vrot.lane.b32.xlu0 %v1183_v40, %s1828_s29 }
0x1335   : > { %v1186_v41 = vpop.permute.xlu1 %1185 }
0x1336   : > { %1188 = vst.msk [vmem:[#allocation4] sm:$0x3] %vm348_vm0, %v1186_v41 }
0x133d   : > { %v1283_v42 = vld [vmem:[#allocation4] sm:$0x3] }
0x133e   : > { %1285 = vrot.lane.b32.xlu1 %v1283_v42, %s1825_s26 }
0x13a6   : > { %v1191_v43 = vpop.permute.xlu0 %1190 }
0x13a7   : > { %1193 = vst.msk [vmem:[#allocation3] sm:$0x3] %vm348_vm0, %v1191_v43  ;;  %1508 = vst.msk [vmem:[%s1409_s8 + $0xc] sm:$0x3] %vm348_vm0, %v1191_v43 }
0x13ae   : > { %v1201_v44 = vld [vmem:[#allocation3] sm:$0x3] }
0x13af   : > { %1609 = vmatmul.mubr.msk.f32.vlgmr.msra.gmra.mrb[8].mxu0 %vm263_vm2, %v1201_v44 }
0x13b0   : > { %v1286_v56 = vpop.permute.xlu1 %1285 }
0x1482   : > { %v1271_v46 = vpop.f32.mrb[8].mxu0 }
0x1483   : > { %v1275_v47 = vadd.f32 %v1510_v45, %v1271_v46  ;;  %v1610_v48 = vpop.f32.mrb[9].mxu0 }
0x1485   : > { %1744 = vtanh.f32 %v1275_v47  ;;  %v1512_v50 = vmul.f32 -1.442695, %v1275_v47 }
0x1487   : > { %1746 = vpow2.f32 %v1512_v50 }
0x148f   : > { %v1745_v49 = vpop.eup %1744 }
0x1490   : > { %1290 = vrot.lane.b32.xlu0 %v1745_v49, %s1824_s25  ;;  %s1417_s25 = scalar_lea.vmem %s2003_s30, %s1509_s10 }
0x1491   : > { %v1747_v51 = vpop.eup %1746 }
0x1492   : > { %v1279_v52 = vadd.f32 1.0, %v1747_v51 }
0x1494   : > { %1748 = vrcp.f32 %v1279_v52 }
0x149e   : > { %v1749_v53 = vpop.eup %1748 }
0x149f   : > { %v1288_v57 = vmul.f32 %v1749_v53, %v1286_v56 }
0x1502   : > { %v1291_v54 = vpop.permute.xlu0 %1290 }
0x1503   : > { %v1293_v55 = vmul.f32 %v1749_v53, %v1291_v54 }
0x1505   : > { %1295 = vrot.lane.b32.xlu0 %v1293_v55, %s1825_s26 }
0x1577   : > { %v1296_v58 = vpop.permute.xlu0 %1295 }
0x1578   : > { %v1298_v59 = vadd.f32 %v1296_v58, %v1288_v57 }
0x157a   : > { %1750 = vtanh.f32 %v1298_v59  ;;  %1306 = vrot.lane.b32.xlu0 %v1298_v59, %s1827_s28 }
0x1584   : > { %v1751_v60 = vpop.eup %1750 }
0x1585   : > { %1301 = vrot.lane.b32.xlu1 %v1751_v60, %s1826_s27 }
0x15ec   : > { %v1307_v61 = vpop.permute.xlu0 %1306 }
0x15ed   : > { %1309 = vst.msk [vmem:[#allocation4] sm:$0x3] %vm348_vm0, %v1307_v61 }
0x15f7   : > { %v1302_v62 = vpop.permute.xlu1 %1301 }
0x15f8   : > { %v1304_v63 = vmul.f32 %v1749_v53, %v1302_v62 }
0x15fa   : > { %1311 = vrot.lane.b32.xlu1 %v1304_v63, %s1828_s29 }
0x166c   : > { %v1312_v2 = vpop.permute.xlu1 %1311 }
0x166d   : > { %1314 = vst.msk [vmem:[#allocation3] sm:$0x3] %vm348_vm0, %v1312_v2  ;;  %1514 = vst.msk [vmem:[%s1417_s25 + $0xe] sm:$0x3] %vm348_vm0, %v1312_v2 }
0x166e PF: > { %p14_p7 = scmp.ge.s32.totalorder %s1876_s20, 4   ;;  %s2160_s15 = smov %s1808_s16 }
0x166f   : > { %s2161_s16 = smov %s1812_s17  ;;  %s2162_s17 = smov %s1886_s23 }
0x1670   : > { %s2163_s18 = smov %s1876_s20  ;;  %16 = sbr.rel (!%p14_p7) target bundleno = 3 (0x3), region = 98 }
0x1677   :  { %1338 = vsyncpa [#allocation6], 1 }
0x1678   :  { %1340 = vsyncpa [#allocation6 + $0x1], 1 }

// kernel: lstm_forward.3
= control target key start
LH: loop header
LB: loop body
LE: loop exit
PB: predicated region body
PF: predicated region fallthrough
CT: control target
= control target key end

     0   :  { %s1740_s15 = smov 0   ;;  %s1952_s0 = inlined_call_operand.vmem [shape: f32[16,32], index: 0, kind: input, shape index: {}]   ;;  %s1953_s1 = inlined_call_operand.vmem [shape: f32[2,32,64], index: 1, kind: input, shape index: {}]   ;;  %s1954_s2 = inlined_call_operand.vmem [shape: f32[2,16,64], index: 2, kind: input, shape index: {}]   ;;  %s1955_s3 = inlined_call_operand.vmem [shape: f32[2,1,64], index: 3, kind: input, shape index: {}]   ;;  %s1956_s4 = inlined_call_operand.vmem [shape: f32[2,16,16], index: 4, kind: output, shape index: {}]  }
   0x1 LB: > { %s1746_s16 = sadd.s32 4294967295, %s1705_s15   ;;  %p1434_p0 = scmp.ge.s32.totalorder %s1705_s15, 1  ;;  %s1705_s15 = sphi %s1740_s15, %s14_s15  }
   0x2   : > { %p180_p1 = scmp.lt.s32.totalorder %s1705_s15, 3 }
   0x4   : > { %p181_p2 = pnand %p1434_p0, %p180_p1 }
   0x5   : > { %p214_p3 = scmp.lt.s32.totalorder (!%p181_p2), %s1746_s16, 1  ;;  %v232_v0 = vld [vmem:[%s1952_s0] sm:$0xff] (!%p181_p2)  ;;  %vm245_vm0 = vcmask (!%p181_p2), 261120   ;;  %vm330_vm1 = vcmask (!%p181_p2), 123904   ;;  %v1707_v1 = vmov (!%p181_p2), 0.0|0.0   ;;  %v1708_v2 = vmov (!%p181_p2), 0.0  }
   0x6   : > { %184 = sbr.rel (%p181_p2) target bundleno = 5712 (0x1650), region = 36  ;;  %1528 = vmatprep.mubr.msk.f32.mxu0 (!%p181_p2), %vm245_vm0, %v232_v0  ;;  %1595 = vmatprep.subr.bf16.mxu1 (!%p181_p2), %v1707_v1  ;;  %331 = vst.msk [vmem:[#allocation3] sm:$0x3] (!%p181_p2), %vm330_vm1, %v1708_v2  ;;  %332 = vst.msk [vmem:[#allocation4] sm:$0x3] (!%p181_p2), %vm330_vm1, %v1708_v2  ;;  %vm1709_vm2 = vmmov (!%p181_p2), 0  }
   0x7   : > { %1535 = vmatprep.mubr.msk.f32.mxu1 (!%p181_p2), %vm1709_vm2, %v1708_v2  ;;  %vm339_vm3 = vcmask (!%p181_p2), 130048   ;;  %v233_v13 = vld [vmem:[%s1952_s0 + $0x8] sm:$0xff] (!%p181_p2)  ;;  %vm327_vm4 = vcmask (!%p181_p2), 523264   ;;  %s335_s7 = smul.u32 (!%p181_p2), 14, %s1746_s16  ;;  %s1710_s9 = smov (!%p181_p2), 96  }
   0x8   : > { %s1711_s10 = smov (!%p181_p2), 16   ;;  %s1712_s11 = smov (!%p181_p2), 32  }
   0x9   : > { %s336_s8 = scalar_lea.vmem (!%p181_p2), [#allocation2], %s335_s7  ;;  %s1713_s12 = smov (!%p181_p2), 112  }
   0xa   : > { %s1714_s13 = smov (!%p181_p2), 80   ;;  %s1452_s23 = smul.u32 (!%p181_p2), 6, %s1746_s16 }
   0xb   : > { %s1458_s26 = sshll.u32 (!%p181_p2), %s1746_s16, 1  ;;  %s817_s29 = ssub.s32 (!%p181_p2), 4, %s1746_s16 }
   0xc   : > { %s1885_s30 = sshll.u32 (!%p181_p2), %s817_s29, 1  ;;  %s1473_s17 = smul.u32 (!%p181_p2), 4294967286, %s1746_s16 }
   0xd   : > { %s1757_s19 = scalar_select %p214_p3, %s1746_s16, 1  ;;  %v338_v12 = vld [vmem:[#allocation3] sm:$0x3]  ;;  %v421_v24 = vld [vmem:[#allocation4] sm:$0x3] }
   0xe   : > { %s819_s5 = scalar_lea.vmem [#allocation2], %s1885_s30 }
   0xf   : > { %s1487_s20 = sshll.u32 %s1757_s19, 5  ;;  %s1488_s21 = sshll.u32 %s1757_s19, 4 }
  0x10   : > { %s218_s24 = scalar_lea.vmem %s1953_s1, %s1487_s20  ;;  %s223_s27 = scalar_lea.vmem %s1954_s2, %s1488_s21 }
  0x11   : > { %v234_v3 = vld [vmem:[%s218_s24] sm:$0xff]  ;;  %v235_v4 = vld [vmem:[%s218_s24 + $0x8] sm:$0xff]  ;;  %v236_v8 = vld [vmem:[%s218_s24 + $0x10] sm:$0xff]  ;;  %s226_s6 = scalar_lea.vmem %s1955_s3, %s1757_s19  ;;  %s1813_s18 = scalar_lea.vmem %s1956_s4, %s1488_s21 }
  0x12   : > { %v333_v5 = vld [vmem:[%s223_s27] sm:$0xff]  ;;  %v1587_v6 = vpack.c.bf16 %v235_v4, %v234_v3  ;;  %v334_v7 = vld [vmem:[%s223_s27 + $0x8] sm:$0xff]  ;;  %v237_v9 = vld [vmem:[%s218_s24 + $0x18] sm:$0xff]  ;;  %s453_s20 = scalar_lea.vmem %s1813_s18, %s335_s7  ;;  %s1446_s19 = smul.u32 10, %s1746_s16 }
  0x13   : > { %v1775_v10 = vpack.c.bf16 %v334_v7, %v333_v5  ;;  %v1591_v11 = vpack.c.bf16 %v237_v9, %v236_v8  ;;  %v1441_v16 = vld [vmem:[%s226_s6] ss:$0 sm:$0xff]  ;;  %s1354_s24 = scalar_lea.vmem [#allocation2], %s1452_s23  ;;  %s1358_s25 = scalar_lea.vmem %s1813_s18, %s1452_s23 }
  0x14   : > { %1588 = vmatprep.subr.bf16.mxu0 %v1587_v6  ;;  %s1346_s21 = scalar_lea.vmem [#allocation2], %s1446_s19  ;;  %s1350_s22 = scalar_lea.vmem %s1813_s18, %s1446_s19 }
  0x15   : > { %1590 = vmatpush3.bf16.msra.mxu0 %v1587_v6  ;;  %1597 = vmatpush3.bf16.msra.mxu1 %v1775_v10  ;;  %s1361_s27 = scalar_lea.vmem [#allocation2], %s1458_s26  ;;  %s1364_s28 = scalar_lea.vmem %s1813_s18, %s1458_s26 }
  0x16   : > { %1592 = vmatprep.subr.bf16.mxu0 %v1591_v11  ;;  %1598 = vmatprep.subr.bf16.mxu1 %v1707_v1  ;;  %s935_s6 = scalar_lea.vmem %s1813_s18, %s1885_s30  ;;  %s1467_s7 = smul.u32 4294967290, %s1746_s16 }
  0x17   : > { %s1384_s19 = scalar_lea.vmem %s1813_s18, %s1473_s17 }
  0x18   : > { %1536 = vmatmul.mubr.msk.f32.vlgmr.msra.gmra.mrb[0].mxu1 %vm339_vm3, %v338_v12  ;;  %s1376_s14 = scalar_lea.vmem %s1813_s18, %s1467_s7 }
  0x19   : > { %1594 = vmatpush3.bf16.msra.mxu0 %v1591_v11  ;;  %1600 = vmatpush3.bf16.msra.mxu1 %v1775_v10 }
  0x1a   : > { %1542 = vmatprep.mubr.msk.f32.mxu1 %vm1709_vm2, %v1708_v2  ;;  %1601 = vmatprep.subr.bf16.mxu0 %v1707_v1 }
  0x1b   : > { %1604 = vmatprep.subr.bf16.mxu1 %v1707_v1 }
  0x1c   : > { %1529 = vmatmul.mubr.msk.f32.vlgmr.msra.gmra.mrb[0].mxu0 %vm245_vm0, %v233_v13 }
  0x1d   : > { %1603 = vmatpush3.bf16.msra.mxu0 %v1775_v10  ;;  %1549 = vmatprep.mubr.msk.f32.mxu0 %vm1709_vm2, %v1708_v2 }
  0x1e   : > { %1607 = vmatprep.subr.bf16.mxu0 %v1707_v1 }
  0xeb   : > { %v409_v14 = vpop.f32.mrb[0].mxu1 }
  0xec   : > { %v1537_v15 = vpop.f32.mrb[1].mxu1 }
  0xef   : > { %v1530_v17 = vpop.f32.mrb[0].mxu0 }
  0xf0   : > { %v324_v18 = vadd.f32 %v1530_v17, %v1441_v16  ;;  %v318_v19 = vpop.f32.mrb[1].mxu0 }
  0xf1   : > { %v319_v20 = vadd.f32 %v1441_v16, %v318_v19 }
  0xf2   : > { %329 = vst.msk [vmem:[#allocation2 + $0x8] sm:$0xff] %vm327_vm4, %v324_v18 }
  0xf3   : > { %328 = vst.msk [vmem:[#allocation2] sm:$0xff] %vm327_vm4, %v319_v20 }
  0xfa   : > { %v337_v21 = vld [vmem:[%s336_s8] sm:$0x3]  ;;  %v1447_v42 = vld [vmem:[%s1346_s21 + $0x2] sm:$0x3]  ;;  %v1453_v0 = vld [vmem:[%s1354_s24 + $0x4] sm:$0x3] }
  0xfb   : > { %v413_v22 = vadd.f32 %v409_v14, %v337_v21  ;;  %s1372_s8 = scalar_lea.vmem [#allocation2], %s1467_s7  ;;  %s1479_s21 = smul.u32 4294967282, %s1746_s16 }
  0xfd   : > { %1635 = vtanh.f32 %v413_v22  ;;  %v1445_v25 = vmul.f32 -1.442695, %v413_v22 }
  0xff   : > { %1637 = vpow2.f32 %v1445_v25  ;;  %v1459_v25 = vld [vmem:[%s1361_s27 + $0x6] sm:$0x3] }
 0x107   : > { %v1636_v23 = vpop.eup %1635 }
 0x108   : > { %428 = vrot.lane.b32.xlu0 %v1636_v23, %s1710_s9 }
 0x109   : > { %v1638_v26 = vpop.eup %1637 }
 0x10a   : > { %v417_v27 = vadd.f32 1.0, %v1638_v26 }
 0x10c   : > { %423 = vrot.lane.b32.xlu0 %v421_v24, %s1711_s10  ;;  %1639 = vrcp.f32 %v417_v27 }
 0x116   : > { %v1640_v28 = vpop.eup %1639 }
 0x17a   : > { %v429_v29 = vpop.permute.xlu0 %428 }
 0x17b   : > { %v431_v30 = vmul.f32 %v1640_v28, %v429_v29 }
 0x17d   : > { %433 = vrot.lane.b32.xlu1 %v431_v30, %s1711_s10 }
 0x17e   : > { %v424_v31 = vpop.permute.xlu0 %423 }
 0x17f   : > { %v426_v32 = vmul.f32 %v1640_v28, %v424_v31 }
 0x1ef   : > { %v434_v33 = vpop.permute.xlu1 %433 }
 0x1f0   : > { %v436_v34 = vadd.f32 %v434_v33, %v426_v32 }
 0x1f2   : > { %1641 = vtanh.f32 %v436_v34 }
 0x1fc   : > { %v1642_v35 = vpop.eup %1641 }
 0x1fd   : > { %439 = vrot.lane.b32.xlu1 %v1642_v35, %s1712_s11 }
 0x201   : > { %444 = vrot.lane.b32.xlu1 %v436_v34, %s1713_s12 }
 0x26f   : > { %v440_v36 = vpop.permute.xlu1 %439 }
 0x270   : > { %v442_v37 = vmul.f32 %v1640_v28, %v440_v36 }
 0x272   : > { %449 = vrot.lane.b32.xlu0 %v442_v37, %s1714_s13 }
 0x273   : > { %v445_v38 = vpop.permute.xlu1 %444 }
 0x274   : > { %447 = vst.msk [vmem:[#allocation4] sm:$0x3] %vm330_vm1, %v445_v38 }
 0x27b   : > { %v542_v39 = vld [vmem:[#allocation4] sm:$0x3] }
 0x27c   : > { %544 = vrot.lane.b32.xlu1 %v542_v39, %s1711_s10 }
 0x2e4   : > { %v450_v40 = vpop.permute.xlu0 %449 }
 0x2e5   : > { %452 = vst.msk [vmem:[#allocation3] sm:$0x3] %vm330_vm1, %v450_v40  ;;  %454 = vst.msk [vmem:[%s453_s20] sm:$0x3] %vm330_vm1, %v450_v40  ;;  %s1380_s20 = scalar_lea.vmem [#allocation2], %s1473_s17 }
 0x2ec   : > { %v460_v41 = vld [vmem:[#allocation3] sm:$0x3] }
 0x2ed   : > { %1543 = vmatmul.mubr.msk.f32.vlgmr.msra.gmra.mrb[2].mxu1 %vm339_vm3, %v460_v41 }
 0x2ee   : > { %1606 = vmatpush3.bf16.msra.mxu1 %v1775_v10  ;;  %1556 = vmatprep.mubr.msk.f32.mxu1 %vm1709_vm2, %v1708_v2  ;;  %v545_v53 = vpop.permute.xlu1 %544 }
 0x2ef   : > { %1610 = vmatprep.subr.bf16.mxu1 %v1707_v1 }
 0x3c0   : > { %v530_v43 = vpop.f32.mrb[2].mxu1 }
 0x3c1   : > { %v534_v44 = vadd.f32 %v1447_v42, %v530_v43  ;;  %v1544_v45 = vpop.f32.mrb[3].mxu1 }
 0x3c3   : > { %1643 = vtanh.f32 %v534_v44  ;;  %v1449_v47 = vmul.f32 -1.442695, %v534_v44 }
 0x3c5   : > { %1645 = vpow2.f32 %v1449_v47 }
 0x3cd   : > { %v1644_v46 = vpop.eup %1643 }
 0x3ce   : > { %549 = vrot.lane.b32.xlu0 %v1644_v46, %s1710_s9  ;;  %v820_v46 = vld [vmem:[%s819_s5] sm:$0x3] }
 0x3cf   : > { %v1646_v48 = vpop.eup %1645 }
 0x3d0   : > { %v538_v49 = vadd.f32 1.0, %v1646_v48 }
 0x3d2   : > { %1647 = vrcp.f32 %v538_v49 }
 0x3dc   : > { %v1648_v50 = vpop.eup %1647 }
 0x3dd   : > { %v547_v54 = vmul.f32 %v1648_v50, %v545_v53 }
 0x440   : > { %v550_v51 = vpop.permute.xlu0 %549 }
 0x441   : > { %v552_v52 = vmul.f32 %v1648_v50, %v550_v51 }
 0x443   : > { %554 = vrot.lane.b32.xlu0 %v552_v52, %s1711_s10 }
 0x4b5   : > { %v555_v55 = vpop.permute.xlu0 %554 }
 0x4b6   : > { %v557_v56 = vadd.f32 %v555_v55, %v547_v54 }
 0x4b8   : > { %1649 = vtanh.f32 %v557_v56 }
 0x4c2   : > { %v1650_v57 = vpop.eup %1649 }
 0x4c3   : > { %560 = vrot.lane.b32.xlu1 %v1650_v57, %s1712_s11 }
 0x4c7   : > { %565 = vrot.lane.b32.xlu1 %v557_v56, %s1713_s12 }
 0x535   : > { %v561_v58 = vpop.permute.xlu1 %560 }
 0x536   : > { %v563_v59 = vmul.f32 %v1648_v50, %v561_v58 }
 0x538   : > { %570 = vrot.lane.b32.xlu0 %v563_v59, %s1714_s13 }
 0x539   : > { %v566_v60 = vpop.permute.xlu1 %565 }
 0x53a   : > { %568 = vst.msk [vmem:[#allocation4] sm:$0x3] %vm330_vm1, %v566_v60 }
 0x541   : > { %v663_v61 = vld [vmem:[#allocation4] sm:$0x3] }
 0x542   : > { %665 = vrot.lane.b32.xlu1 %v663_v61, %s1711_s10 }
 0x5aa   : > { %v571_v62 = vpop.permute.xlu0 %570 }
 0x5ab   : > { %573 = vst.msk [vmem:[#allocation3] sm:$0x3] %vm330_vm1, %v571_v62  ;;  %1451 = vst.msk [vmem:[%s1350_s22 + $0x2] sm:$0x3] %vm330_vm1, %v571_v62  ;;  %s1388_s22 = scalar_lea.vmem [#allocation2], %s1479_s21 }
 0x5b2   : > { %v581_v63 = vld [vmem:[#allocation3] sm:$0x3] }
 0x5b3   : > { %1550 = vmatmul.mubr.msk.f32.vlgmr.msra.gmra.mrb[2].mxu0 %vm339_vm3, %v581_v63 }
 0x5b4   : > { %1609 = vmatpush3.bf16.msra.mxu0 %v1775_v10  ;;  %1563 = vmatprep.mubr.msk.f32.mxu0 %vm1709_vm2, %v1708_v2  ;;  %v666_v14 = vpop.permute.xlu1 %665 }
 0x5b5   : > { %1613 = vmatprep.subr.bf16.mxu0 %v1707_v1 }
 0x686   : > { %v651_v3 = vpop.f32.mrb[2].mxu0 }
 0x687   : > { %v655_v4 = vadd.f32 %v1453_v0, %v651_v3  ;;  %v1551_v5 = vpop.f32.mrb[3].mxu0 }
 0x689   : > { %1651 = vtanh.f32 %v655_v4  ;;  %v1455_v7 = vmul.f32 -1.442695, %v655_v4 }
 0x68b   : > { %1653 = vpow2.f32 %v1455_v7 }
 0x693   : > { %v1652_v6 = vpop.eup %1651 }
 0x694   : > { %670 = vrot.lane.b32.xlu0 %v1652_v6, %s1710_s9  ;;  %v1468_v6 = vld [vmem:[%s1372_s8 + $0xa] sm:$0x3] }
 0x695   : > { %v1654_v8 = vpop.eup %1653 }
 0x696   : > { %v659_v9 = vadd.f32 1.0, %v1654_v8 }
 0x698   : > { %1655 = vrcp.f32 %v659_v9 }
 0x6a2   : > { %v1656_v11 = vpop.eup %1655 }
 0x6a3   : > { %v668_v15 = vmul.f32 %v1656_v11, %v666_v14 }
 0x706   : > { %v671_v12 = vpop.permute.xlu0 %670 }
 0x707   : > { %v673_v13 = vmul.f32 %v1656_v11, %v671_v12 }
 0x709   : > { %675 = vrot.lane.b32.xlu0 %v673_v13, %s1711_s10 }
 0x77b   : > { %v676_v16 = vpop.permute.xlu0 %675 }
 0x77c   : > { %v678_v17 = vadd.f32 %v676_v16, %v668_v15 }
 0x77e   : > { %1657 = vtanh.f32 %v678_v17 }
 0x788   : > { %v1658_v18 = vpop.eup %1657 }
 0x789   : > { %681 = vrot.lane.b32.xlu1 %v1658_v18, %s1712_s11 }
 0x78d   : > { %686 = vrot.lane.b32.xlu1 %v678_v17, %s1713_s12 }
 0x7fb   : > { %v682_v19 = vpop.permute.xlu1 %681 }
 0x7fc   : > { %v684_v20 = vmul.f32 %v1656_v11, %v682_v19 }
 0x7fe   : > { %691 = vrot.lane.b32.xlu0 %v684_v20, %s1714_s13 }
 0x7ff   : > { %v687_v21 = vpop.permute.xlu1 %686 }
 0x800   : > { %689 = vst.msk [vmem:[#allocation4] sm:$0x3] %vm330_vm1, %v687_v21 }
 0x807   : > { %v783_v22 = vld [vmem:[#allocation4] sm:$0x3] }
 0x808   : > { %785 = vrot.lane.b32.xlu1 %v783_v22, %s1711_s10 }
 0x870   : > { %v692_v23 = vpop.permute.xlu0 %691 }
 0x871   : > { %694 = vst.msk [vmem:[#allocation3] sm:$0x3] %vm330_vm1, %v692_v23  ;;  %1457 = vst.msk [vmem:[%s1358_s25 + $0x4] sm:$0x3] %vm330_vm1, %v692_v23 }
 0x878   : > { %v701_v24 = vld [vmem:[#allocation3] sm:$0x3] }
 0x879   : > { %1557 = vmatmul.mubr.msk.f32.vlgmr.msra.gmra.mrb[4].mxu1 %vm339_vm3, %v701_v24 }
 0x87a   : > { %1612 = vmatpush3.bf16.msra.mxu1 %v1775_v10  ;;  %1570 = vmatprep.mubr.msk.f32.mxu1 %vm1709_vm2, %v1708_v2 }
 0x87b   : > { %1616 = vmatprep.subr.bf16.mxu1 %v1707_v1  ;;  %v786_v1 = vpop.permute.xlu1 %785 }
 0x94c   : > { %v771_v26 = vpop.f32.mrb[4].mxu1 }
 0x94d   : > { %v775_v27 = vadd.f32 %v1459_v25, %v771_v26  ;;  %v1558_v28 = vpop.f32.mrb[5].mxu1 }
 0x94f   : > { %1659 = vtanh.f32 %v775_v27  ;;  %v1461_v30 = vmul.f32 -1.442695, %v775_v27  ;;  %v1474_v27 = vld [vmem:[%s1380_s20 + $0xc] sm:$0x3] }
 0x951   : > { %1661 = vpow2.f32 %v1461_v30 }
 0x959   : > { %v1660_v29 = vpop.eup %1659 }
 0x95a   : > { %790 = vrot.lane.b32.xlu0 %v1660_v29, %s1710_s9 }
 0x95b   : > { %v1662_v31 = vpop.eup %1661 }
 0x95c   : > { %v779_v32 = vadd.f32 1.0, %v1662_v31 }
 0x95e   : > { %1663 = vrcp.f32 %v779_v32 }
 0x968   : > { %v1664_v33 = vpop.eup %1663 }
 0x969   : > { %v788_v36 = vmul.f32 %v1664_v33, %v786_v1 }
 0x9cc   : > { %v791_v34 = vpop.permute.xlu0 %790 }
 0x9cd   : > { %v793_v35 = vmul.f32 %v1664_v33, %v791_v34 }
 0x9cf   : > { %795 = vrot.lane.b32.xlu0 %v793_v35, %s1711_s10 }
 0xa41   : > { %v796_v37 = vpop.permute.xlu0 %795 }
 0xa42   : > { %v798_v38 = vadd.f32 %v796_v37, %v788_v36 }
 0xa44   : > { %1665 = vtanh.f32 %v798_v38 }
 0xa4e   : > { %v1666_v39 = vpop.eup %1665 }
 0xa4f   : > { %801 = vrot.lane.b32.xlu1 %v1666_v39, %s1712_s11 }
 0xa53   : > { %806 = vrot.lane.b32.xlu1 %v798_v38, %s1713_s12 }
 0xac1   : > { %v802_v40 = vpop.permute.xlu1 %801 }
 0xac2   : > { %v804_v41 = vmul.f32 %v1664_v33, %v802_v40 }
 0xac4   : > { %811 = vrot.lane.b32.xlu0 %v804_v41, %s1714_s13 }
 0xac5   : > { %v807_v42 = vpop.permute.xlu1 %806 }
 0xac6   : > { %809 = vst.msk [vmem:[#allocation4] sm:$0x3] %vm330_vm1, %v807_v42 }
 0xacd   : > { %v903_v43 = vld [vmem:[#allocation4] sm:$0x3] }
 0xace   : > { %905 = vrot.lane.b32.xlu1 %v903_v43, %s1711_s10 }
 0xb36   : > { %v812_v44 = vpop.permute.xlu0 %811 }
 0xb37   : > { %814 = vst.msk [vmem:[#allocation3] sm:$0x3] %vm330_vm1, %v812_v44  ;;  %1463 = vst.msk [vmem:[%s1364_s28 + $0x6] sm:$0x3] %vm330_vm1, %v812_v44 }
 0xb3e   : > { %v821_v45 = vld [vmem:[#allocation3] sm:$0x3] }
 0xb3f   : > { %1564 = vmatmul.mubr.msk.f32.vlgmr.msra.gmra.mrb[4].mxu0 %vm339_vm3, %v821_v45 }
 0xb40   : > { %1615 = vmatpush3.bf16.msra.mxu0 %v1775_v10  ;;  %1577 = vmatprep.mubr.msk.f32.mxu0 %vm1709_vm2, %v1708_v2  ;;  %v906_v57 = vpop.permute.xlu1 %905 }
 0xc12   : > { %v891_v47 = vpop.f32.mrb[4].mxu0 }
 0xc13   : > { %v895_v48 = vadd.f32 %v891_v47, %v820_v46  ;;  %v1565_v49 = vpop.f32.mrb[5].mxu0 }
 0xc15   : > { %1667 = vtanh.f32 %v895_v48  ;;  %v1466_v51 = vmul.f32 -1.442695, %v895_v48  ;;  %v1480_v48 = vld [vmem:[%s1388_s22 + $0xe] sm:$0x3] }
 0xc17   : > { %1669 = vpow2.f32 %v1466_v51 }
 0xc1f   : > { %v1668_v50 = vpop.eup %1667 }
 0xc20   : > { %910 = vrot.lane.b32.xlu0 %v1668_v50, %s1710_s9 }
 0xc21   : > { %v1670_v52 = vpop.eup %1669 }
 0xc22   : > { %v899_v53 = vadd.f32 1.0, %v1670_v52 }
 0xc24   : > { %1671 = vrcp.f32 %v899_v53 }
 0xc2e   : > { %v1672_v54 = vpop.eup %1671 }
 0xc2f   : > { %v908_v58 = vmul.f32 %v1672_v54, %v906_v57 }
 0xc92   : > { %v911_v55 = vpop.permute.xlu0 %910 }
 0xc93   : > { %v913_v56 = vmul.f32 %v1672_v54, %v911_v55 }
 0xc95   : > { %915 = vrot.lane.b32.xlu0 %v913_v56, %s1711_s10 }
 0xd07   : > { %v916_v59 = vpop.permute.xlu0 %915 }
 0xd08   : > { %v918_v60 = vadd.f32 %v916_v59, %v908_v58 }
 0xd0a   : > { %1673 = vtanh.f32 %v918_v60 }
 0xd14   : > { %v1674_v61 = vpop.eup %1673 }
 0xd15   : > { %921 = vrot.lane.b32.xlu1 %v1674_v61, %s1712_s11 }
 0xd19   : > { %926 = vrot.lane.b32.xlu1 %v918_v60, %s1713_s12 }
 0xd87   : > { %v922_v62 = vpop.permute.xlu1 %921 }
 0xd88   : > { %v924_v63 = vmul.f32 %v1672_v54, %v922_v62 }
 0xd8a   : > { %931 = vrot.lane.b32.xlu0 %v924_v63, %s1714_s13 }
 0xd8b   : > { %v927_v0 = vpop.permute.xlu1 %926 }
 0xd8c   : > { %929 = vst.msk [vmem:[#allocation4] sm:$0x3] %vm330_vm1, %v927_v0 }
 0xd93   : > { %v1024_v3 = vld [vmem:[#allocation4] sm:$0x3] }
 0xd94   : > { %1026 = vrot.lane.b32.xlu1 %v1024_v3, %s1711_s10 }
 0xdfc   : > { %v932_v4 = vpop.permute.xlu0 %931 }
 0xdfd   : > { %934 = vst.msk [vmem:[#allocation3] sm:$0x3] %vm330_vm1, %v932_v4  ;;  %936 = vst.msk [vmem:[%s935_s6] sm:$0x3] %vm330_vm1, %v932_v4 }
 0xe04   : > { %v942_v5 = vld [vmem:[#allocation3] sm:$0x3] }
 0xe05   : > { %1571 = vmatmul.mubr.msk.f32.vlgmr.msra.gmra.mrb[6].mxu1 %vm339_vm3, %v942_v5 }
 0xe06   : > { %1618 = vmatpush3.bf16.msra.mxu1 %v1775_v10  ;;  %1584 = vmatprep.mubr.msk.f32.mxu1 %vm1709_vm2, %v1708_v2  ;;  %v1027_v2 = vpop.permute.xlu1 %1026 }
 0xed8   : > { %v1012_v7 = vpop.f32.mrb[6].mxu1 }
 0xed9   : > { %v1016_v8 = vadd.f32 %v1468_v6, %v1012_v7  ;;  %v1572_v9 = vpop.f32.mrb[7].mxu1 }
 0xedb   : > { %1675 = vtanh.f32 %v1016_v8  ;;  %v1470_v12 = vmul.f32 -1.442695, %v1016_v8 }
 0xedd   : > { %1677 = vpow2.f32 %v1470_v12 }
 0xee5   : > { %v1676_v11 = vpop.eup %1675 }
 0xee6   : > { %1031 = vrot.lane.b32.xlu0 %v1676_v11, %s1710_s9 }
 0xee7   : > { %v1678_v13 = vpop.eup %1677 }
 0xee8   : > { %v1020_v14 = vadd.f32 1.0, %v1678_v13 }
 0xeea   : > { %1679 = vrcp.f32 %v1020_v14 }
 0xef4   : > { %v1680_v10 = vpop.eup %1679 }
 0xef5   : > { %v1029_v17 = vmul.f32 %v1680_v10, %v1027_v2 }
 0xf58   : > { %v1032_v15 = vpop.permute.xlu0 %1031 }
 0xf59   : > { %v1034_v16 = vmul.f32 %v1680_v10, %v1032_v15 }
 0xf5b   : > { %1036 = vrot.lane.b32.xlu0 %v1034_v16, %s1711_s10 }
 0xfcd   : > { %v1037_v18 = vpop.permute.xlu0 %1036 }
 0xfce   : > { %v1039_v19 = vadd.f32 %v1037_v18, %v1029_v17 }
 0xfd0   : > { %1681 = vtanh.f32 %v1039_v19 }
 0xfda   : > { %v1682_v20 = vpop.eup %1681 }
 0xfdb   : > { %1042 = vrot.lane.b32.xlu1 %v1682_v20, %s1712_s11 }
 0xfdf   : > { %1047 = vrot.lane.b32.xlu1 %v1039_v19, %s1713_s12 }
0x104d   : > { %v1043_v21 = vpop.permute.xlu1 %1042 }
0x104e   : > { %v1045_v22 = vmul.f32 %v1680_v10, %v1043_v21 }
0x1050   : > { %1052 = vrot.lane.b32.xlu0 %v1045_v22, %s1714_s13 }
0x1051   : > { %v1048_v23 = vpop.permute.xlu1 %1047 }
0x1052   : > { %1050 = vst.msk [vmem:[#allocation4] sm:$0x3] %vm330_vm1, %v1048_v23 }
0x1059   : > { %v1145_v24 = vld [vmem:[#allocation4] sm:$0x3] }
0x105a   : > { %1147 = vrot.lane.b32.xlu1 %v1145_v24, %s1711_s10 }
0x10c2   : > { %v1053_v25 = vpop.permute.xlu0 %1052 }
0x10c3   : > { %1055 = vst.msk [vmem:[#allocation3] sm:$0x3] %vm330_vm1, %v1053_v25  ;;  %1472 = vst.msk [vmem:[%s1376_s14 + $0xa] sm:$0x3] %vm330_vm1, %v1053_v25 }
0x10ca   : > { %v1063_v26 = vld [vmem:[#allocation3] sm:$0x3] }
0x10cb   : > { %1578 = vmatmul.mubr.msk.f32.vlgmr.msra.gmra.mrb[6].mxu0 %vm339_vm3, %v1063_v26 }
0x10cc   : > { %v1148_v37 = vpop.permute.xlu1 %1147 }
0x119e   : > { %v1133_v28 = vpop.f32.mrb[6].mxu0 }
0x119f   : > { %v1137_v29 = vadd.f32 %v1474_v27, %v1133_v28  ;;  %v1579_v30 = vpop.f32.mrb[7].mxu0 }
0x11a1   : > { %1683 = vtanh.f32 %v1137_v29  ;;  %v1476_v32 = vmul.f32 -1.442695, %v1137_v29 }
0x11a3   : > { %1685 = vpow2.f32 %v1476_v32 }
0x11ab   : > { %v1684_v31 = vpop.eup %1683 }
0x11ac   : > { %1152 = vrot.lane.b32.xlu0 %v1684_v31, %s1710_s9 }
0x11ad   : > { %v1686_v33 = vpop.eup %1685 }
0x11ae   : > { %v1141_v34 = vadd.f32 1.0, %v1686_v33 }
0x11b0   : > { %1687 = vrcp.f32 %v1141_v34 }
0x11ba   : > { %v1688_v35 = vpop.eup %1687 }
0x11bb   : > { %v1150_v38 = vmul.f32 %v1688_v35, %v1148_v37 }
0x121e   : > { %v1153_v1 = vpop.permute.xlu0 %1152 }
0x121f   : > { %v1155_v36 = vmul.f32 %v1688_v35, %v1153_v1 }
0x1221   : > { %1157 = vrot.lane.b32.xlu0 %v1155_v36, %s1711_s10 }
0x1293   : > { %v1158_v39 = vpop.permute.xlu0 %1157 }
0x1294   : > { %v1160_v40 = vadd.f32 %v1158_v39, %v1150_v38 }
0x1296   : > { %1689 = vtanh.f32 %v1160_v40 }
0x12a0   : > { %v1690_v41 = vpop.eup %1689 }
0x12a1   : > { %1163 = vrot.lane.b32.xlu1 %v1690_v41, %s1712_s11 }
0x12a5   : > { %1168 = vrot.lane.b32.xlu1 %v1160_v40, %s1713_s12 }
0x1313   : > { %v1164_v42 = vpop.permute.xlu1 %1163 }
0x1314   : > { %v1166_v43 = vmul.f32 %v1688_v35, %v1164_v42 }
0x1316   : > { %1173 = vrot.lane.b32.xlu0 %v1166_v43, %s1714_s13 }
0x1317   : > { %v1169_v44 = vpop.permute.xlu1 %1168 }
0x1318   : > { %1171 = vst.msk [vmem:[#allocation4] sm:$0x3] %vm330_vm1, %v1169_v44 }
0x131f   : > { %v1266_v45 = vld [vmem:[#allocation4] sm:$0x3] }
0x1320   : > { %1268 = vrot.lane.b32.xlu1 %v1266_v45, %s1711_s10 }
0x1388   : > { %v1174_v46 = vpop.permute.xlu0 %1173 }
0x1389   : > { %1176 = vst.msk [vmem:[#allocation3] sm:$0x3] %vm330_vm1, %v1174_v46  ;;  %1478 = vst.msk [vmem:[%s1384_s19 + $0xc] sm:$0x3] %vm330_vm1, %v1174_v46 }
0x1390   : > { %v1184_v47 = vld [vmem:[#allocation3] sm:$0x3] }
0x1391   : > { %1585 = vmatmul.mubr.msk.f32.vlgmr.msra.gmra.mrb[8].mxu1 %vm339_vm3, %v1184_v47 }
0x1392   : > { %v1269_v59 = vpop.permute.xlu1 %1268 }
0x1464   : > { %v1254_v49 = vpop.f32.mrb[8].mxu1 }
0x1465   : > { %v1258_v50 = vadd.f32 %v1480_v48, %v1254_v49  ;;  %v1586_v51 = vpop.f32.mrb[9].mxu1 }
0x1467   : > { %1691 = vtanh.f32 %v1258_v50  ;;  %v1482_v53 = vmul.f32 -1.442695, %v1258_v50 }
0x1469   : > { %1693 = vpow2.f32 %v1482_v53 }
0x1471   : > { %v1692_v52 = vpop.eup %1691 }
0x1472   : > { %1273 = vrot.lane.b32.xlu0 %v1692_v52, %s1710_s9  ;;  %s1392_s9 = scalar_lea.vmem %s1813_s18, %s1479_s21 }
0x1473   : > { %v1694_v54 = vpop.eup %1693 }
0x1474   : > { %v1262_v55 = vadd.f32 1.0, %v1694_v54 }
0x1476   : > { %1695 = vrcp.f32 %v1262_v55 }
0x1480   : > { %v1696_v56 = vpop.eup %1695 }
0x1481   : > { %v1271_v60 = vmul.f32 %v1696_v56, %v1269_v59 }
0x14e4   : > { %v1274_v57 = vpop.permute.xlu0 %1273 }
0x14e5   : > { %v1276_v58 = vmul.f32 %v1696_v56, %v1274_v57 }
0x14e7   : > { %1278 = vrot.lane.b32.xlu0 %v1276_v58, %s1711_s10 }
0x1559   : > { %v1279_v61 = vpop.permute.xlu0 %1278 }
0x155a   : > { %v1281_v62 = vadd.f32 %v1279_v61, %v1271_v60 }
0x155c   : > { %1697 = vtanh.f32 %v1281_v62  ;;  %1289 = vrot.lane.b32.xlu0 %v1281_v62, %s1713_s12 }
0x1566   : > { %v1698_v63 = vpop.eup %1697 }
0x1567   : > { %1284 = vrot.lane.b32.xlu1 %v1698_v63, %s1712_s11 }
0x15ce   : > { %v1290_v0 = vpop.permute.xlu0 %1289 }
0x15cf   : > { %1292 = vst.msk [vmem:[#allocation4] sm:$0x3] %vm330_vm1, %v1290_v0 }
0x15d9   : > { %v1285_v3 = vpop.permute.xlu1 %1284 }
0x15da   : > { %v1287_v4 = vmul.f32 %v1696_v56, %v1285_v3 }
0x15dc   : > { %1294 = vrot.lane.b32.xlu1 %v1287_v4, %s1714_s13 }
0x164e   : > { %v1295_v5 = vpop.permute.xlu1 %1294 }
0x164f   : > { %1297 = vst.msk [vmem:[#allocation3] sm:$0x3] %vm330_vm1, %v1295_v5  ;;  %1484 = vst.msk [vmem:[%s1392_s9 + $0xe] sm:$0x3] %vm330_vm1, %v1295_v5 }
0x1650 PF: > { %s14_s15 = sadd.s32 1, %s1705_s15  }
0x1651   : > { %p11_p4 = scmp.ge.s32.totalorder %s14_s15, 4  }
0x1653   :  { %13 = sbr.rel (!%p11_p4) target bundleno = 1 (0x1), region = 88 }

</bundles_post_ra>
